<compile_context>
chip_gen: v7x
topology: tpu7x:2x2x1
jax: 0.10.0
libtpu: 0.0.40
codegen_flags: <defaults>
</compile_context>

<pallas_src>
import jax
import jax.numpy as jnp
from jax.experimental import pallas as pl
from jax.experimental.pallas import tpu as pltpu

IMG_SIZE = 28
LATENT_DIM = 100
H1, H2, H3 = 128, 256, 512
OUT_DIM = IMG_SIZE * IMG_SIZE     # 784
LATENT_PAD = 128                  # 100 -> 128 : lane-aligned K for layer 1
OUT_PAD = 896                     # 784 -> 7*128 : lane-dense output stores


def _leaky_relu(x, slope=0.2):
    return jnp.where(x >= 0, x, slope * x)


def generator_kernel(z_ref,
                     w1_ref, b1_ref,
                     w2_ref, b2_ref,
                     w3_ref, b3_ref,
                     w4_ref, b4_ref,
                     out_ref):
    # z_ref: (TB, LATENT_PAD) bf16; weights bf16; biases f32; out f32.
    x = z_ref[...]

    # layer1: Linear(128pad -> 128) + LeakyReLU(0.2)   (bf16 MXU, f32 acc)
    h = jnp.dot(x, w1_ref[...], preferred_element_type=jnp.float32) + b1_ref[...]
    h = _leaky_relu(h).astype(jnp.bfloat16)

    # layer2: Linear(128 -> 256) + LeakyReLU(0.2)
    h = jnp.dot(h, w2_ref[...], preferred_element_type=jnp.float32) + b2_ref[...]
    h = _leaky_relu(h).astype(jnp.bfloat16)

    # layer3: Linear(256 -> 512) + LeakyReLU(0.2)
    h = jnp.dot(h, w3_ref[...], preferred_element_type=jnp.float32) + b3_ref[...]
    h = _leaky_relu(h).astype(jnp.bfloat16)

    # layer4: Linear(512 -> 896pad) + Tanh  (tanh rides the EUP slot, ~free)
    h = jnp.dot(h, w4_ref[...], preferred_element_type=jnp.float32) + b4_ref[...]
    out_ref[...] = jnp.tanh(h)


def _round_up(x, m):
    return ((x + m - 1) // m) * m


def generator_forward(z, params, *, batch_tile=256):
    """z: (B, LATENT_DIM) float32 -> (B, 1, IMG_SIZE, IMG_SIZE) float32."""
    B = z.shape[0]
    z = z.reshape(B, -1)                      # x.view(x.size(0), -1)
    assert z.shape[1] == LATENT_DIM

    # Fixed batch tile (multiple of 8 f32 sublanes; 256 also fills MXU M on
    # v6e/v7x). Shrink for tiny batches so we don't blow up the test case.
    tile = min(_round_up(batch_tile, 8), _round_up(B, 8))
    Bp = _round_up(B, tile)
    grid = (Bp // tile,)

    (w1, b1), (w2, b2), (w3, b3), (w4, b4) = params

    # --- pad + cast (all zero padding, so the math is unchanged) ------------
    zp = jnp.zeros((Bp, LATENT_PAD), jnp.bfloat16)
    zp = zp.at[:B, :LATENT_DIM].set(z.astype(jnp.bfloat16))

    w1p = jnp.zeros((LATENT_PAD, H1), jnp.bfloat16)
    w1p = w1p.at[:LATENT_DIM, :].set(w1.astype(jnp.bfloat16))

    w2b = w2.astype(jnp.bfloat16)
    w3b = w3.astype(jnp.bfloat16)

    w4p = jnp.zeros((H3, OUT_PAD), jnp.bfloat16)
    w4p = w4p.at[:, :OUT_DIM].set(w4.astype(jnp.bfloat16))
    b4p = jnp.zeros((1, OUT_PAD), jnp.float32)
    b4p = b4p.at[:, :OUT_DIM].set(b4)

    b1f = b1.astype(jnp.float32)
    b2f = b2.astype(jnp.float32)
    b3f = b3.astype(jnp.float32)

    # Weights/biases are small and constant across the grid -> full-extent
    # blocks with a constant index_map (replicated to every step).
    def rep(shape):
        return pl.BlockSpec(shape, lambda i: (0, 0))

    in_specs = [
        pl.BlockSpec((tile, LATENT_PAD), lambda i: (i, 0)),   # z tile
        rep(w1p.shape), rep(b1f.shape),
        rep(w2b.shape), rep(b2f.shape),
        rep(w3b.shape), rep(b3f.shape),
        rep(w4p.shape), rep(b4p.shape),
    ]
    out_spec = pl.BlockSpec((tile, OUT_PAD), lambda i: (i, 0))

    flat = pl.pallas_call(
        generator_kernel,
        out_shape=jax.ShapeDtypeStruct((Bp, OUT_PAD), jnp.float32),
        grid_spec=pltpu.PrefetchScalarGridSpec(
            num_scalar_prefetch=0,
            grid=grid,
            in_specs=in_specs,
            out_specs=out_spec,
        ),
        compiler_params=pltpu.CompilerParams(
            # Batch axis is independent -> megacore shards it on v7x.
            dimension_semantics=("parallel",),
            # Per-step working set is ~5 MB (bf16 weights double-buffered +
            # z/out tiles); 32 MiB is a safe explicit budget on v5e/v6e/v7x.
            vmem_limit_bytes=32 * 1024 * 1024,
        ),
    )(zp, w1p, b1f, w2b, b2f, w3b, b3f, w4p, b4p)

    # Drop batch/feature padding, then NCHW reshape like the PyTorch module.
    return flat[:B, :OUT_DIM].reshape(B, 1, IMG_SIZE, IMG_SIZE)


def init_params(key):
    """Deterministic params, PyTorch nn.Linear-style uniform(-1/sqrt(fan_in), +)."""
    dims = [(LATENT_DIM, H1), (H1, H2), (H2, H3), (H3, OUT_DIM)]
    params = []
    for (fan_in, fan_out) in dims:
        key, kw, kb = jax.random.split(key, 3)
        bound = 1.0 / jnp.sqrt(fan_in)
        # stored as (in, out) so the kernel does x @ W + b
        w = jax.random.uniform(kw, (fan_in, fan_out), jnp.float32, -bound, bound)
        b = jax.random.uniform(kb, (1, fan_out), jnp.float32, -bound, bound)
        params.append((w, b))
    return params


def reference_forward(z, params):
    x = z.reshape(z.shape[0], -1)
    for i, (w, b) in enumerate(params):
        x = x @ w + b
        if i < 3:
            x = jnp.where(x >= 0, x, 0.2 * x)
        else:
            x = jnp.tanh(x)
    return x.reshape(z.shape[0], 1, IMG_SIZE, IMG_SIZE)


if __name__ == "__main__":
    key = jax.random.PRNGKey(0)
    kp, kz = jax.random.split(key)
    params = init_params(kp)

    B = 2
    z = jax.random.normal(kz, (B, LATENT_DIM), jnp.float32)

    out = generator_forward(z, params)
    out = jax.block_until_ready(out)

    ref = reference_forward(z, params)
    assert out.shape == (B, 1, IMG_SIZE, IMG_SIZE), out.shape
    # bf16 MXU path with f32 accumulation -> relaxed tolerance vs. f32 reference.
    assert jnp.allclose(out, ref, atol=5e-2, rtol=5e-2), (
        "mismatch vs reference, max abs err = "
        f"{float(jnp.max(jnp.abs(out - ref)))}")

    print("KERNEL_OK")
</pallas_src>

<mosaic_0001>
module attributes {stable_mosaic.version = 11 : i64} {
  func.func @generator_kernel(%arg0: i32, %arg1: memref<8x128xbf16, #tpu.memory_space<vmem>>, %arg2: memref<128x128xbf16, #tpu.memory_space<vmem>>, %arg3: memref<1x128xf32, #tpu.memory_space<vmem>>, %arg4: memref<128x256xbf16, #tpu.memory_space<vmem>>, %arg5: memref<1x256xf32, #tpu.memory_space<vmem>>, %arg6: memref<256x512xbf16, #tpu.memory_space<vmem>>, %arg7: memref<1x512xf32, #tpu.memory_space<vmem>>, %arg8: memref<512x896xbf16, #tpu.memory_space<vmem>>, %arg9: memref<1x896xf32, #tpu.memory_space<vmem>>, %arg10: memref<8x896xf32, #tpu.memory_space<vmem>>) attributes {dimension_semantics = [#tpu.dimension_semantics<parallel>], iteration_bounds = array<i64: 1>, scalar_prefetch = 0 : i64, scratch_operands = 0 : i64, tpu.core_type = #tpu.core_type<tc>, window_params = [{transform_indices = @transform_0, window_bounds = array<i64: 8, 128>}, {pipeline_mode = #tpu.pipeline_mode<synchronous>, transform_indices = @transform_1, window_bounds = array<i64: 128, 128>}, {pipeline_mode = #tpu.pipeline_mode<synchronous>, transform_indices = @transform_2, window_bounds = array<i64: 1, 128>}, {pipeline_mode = #tpu.pipeline_mode<synchronous>, transform_indices = @transform_3, window_bounds = array<i64: 128, 256>}, {pipeline_mode = #tpu.pipeline_mode<synchronous>, transform_indices = @transform_4, window_bounds = array<i64: 1, 256>}, {pipeline_mode = #tpu.pipeline_mode<synchronous>, transform_indices = @transform_5, window_bounds = array<i64: 256, 512>}, {pipeline_mode = #tpu.pipeline_mode<synchronous>, transform_indices = @transform_6, window_bounds = array<i64: 1, 512>}, {pipeline_mode = #tpu.pipeline_mode<synchronous>, transform_indices = @transform_7, window_bounds = array<i64: 512, 896>}, {pipeline_mode = #tpu.pipeline_mode<synchronous>, transform_indices = @transform_8, window_bounds = array<i64: 1, 896>}, {transform_indices = @transform_9, window_bounds = array<i64: 8, 896>}]} {
    %c0 = arith.constant 0 : index
    %c0_0 = arith.constant 0 : index
    %0 = vector.load %arg1[%c0, %c0_0] : memref<8x128xbf16, #tpu.memory_space<vmem>>, vector<8x128xbf16>
    %c0_1 = arith.constant 0 : index
    %c0_2 = arith.constant 0 : index
    %1 = vector.load %arg2[%c0_1, %c0_2] : memref<128x128xbf16, #tpu.memory_space<vmem>>, vector<128x128xbf16>
    %cst = arith.constant dense<0.000000e+00> : vector<8x128xf32>
    %2 = tpu.matmul %0, %1, %cst {dimension_numbers = #tpu.dot_dimension_numbers<[1], [0], [0], [1], [0, 0, 1, 1], [], []>} : vector<8x128xbf16>, vector<128x128xbf16>, vector<8x128xf32> -> vector<8x128xf32>
    %c0_3 = arith.constant 0 : index
    %c0_4 = arith.constant 0 : index
    %3 = vector.load %arg3[%c0_3, %c0_4] : memref<1x128xf32, #tpu.memory_space<vmem>>, vector<1x128xf32>
    %4 = vector.broadcast %3 : vector<1x128xf32> to vector<8x128xf32>
    %5 = arith.addf %2, %4 : vector<8x128xf32>
    %cst_5 = arith.constant 0.000000e+00 : f32
    %6 = vector.broadcast %cst_5 : f32 to vector<8x128xf32>
    %7 = arith.cmpf oge, %5, %6 : vector<8x128xf32>
    %cst_6 = arith.constant 2.000000e-01 : f32
    %8 = vector.broadcast %cst_6 : f32 to vector<8x128xf32>
    %9 = arith.mulf %8, %5 : vector<8x128xf32>
    %10 = arith.select %7, %5, %9 : vector<8x128xi1>, vector<8x128xf32>
    %11 = arith.truncf %10 : vector<8x128xf32> to vector<8x128xbf16>
    %c0_7 = arith.constant 0 : index
    %c0_8 = arith.constant 0 : index
    %12 = vector.load %arg4[%c0_7, %c0_8] : memref<128x256xbf16, #tpu.memory_space<vmem>>, vector<128x256xbf16>
    %cst_9 = arith.constant dense<0.000000e+00> : vector<8x256xf32>
    %13 = tpu.matmul %11, %12, %cst_9 {dimension_numbers = #tpu.dot_dimension_numbers<[1], [0], [0], [1], [0, 0, 1, 1], [], []>} : vector<8x128xbf16>, vector<128x256xbf16>, vector<8x256xf32> -> vector<8x256xf32>
    %c0_10 = arith.constant 0 : index
    %c0_11 = arith.constant 0 : index
    %14 = vector.load %arg5[%c0_10, %c0_11] : memref<1x256xf32, #tpu.memory_space<vmem>>, vector<1x256xf32>
    %15 = vector.broadcast %14 : vector<1x256xf32> to vector<8x256xf32>
    %16 = arith.addf %13, %15 : vector<8x256xf32>
    %cst_12 = arith.constant 0.000000e+00 : f32
    %17 = vector.broadcast %cst_12 : f32 to vector<8x256xf32>
    %18 = arith.cmpf oge, %16, %17 : vector<8x256xf32>
    %cst_13 = arith.constant 2.000000e-01 : f32
    %19 = vector.broadcast %cst_13 : f32 to vector<8x256xf32>
    %20 = arith.mulf %19, %16 : vector<8x256xf32>
    %21 = arith.select %18, %16, %20 : vector<8x256xi1>, vector<8x256xf32>
    %22 = arith.truncf %21 : vector<8x256xf32> to vector<8x256xbf16>
    %c0_14 = arith.constant 0 : index
    %c0_15 = arith.constant 0 : index
    %23 = vector.load %arg6[%c0_14, %c0_15] : memref<256x512xbf16, #tpu.memory_space<vmem>>, vector<256x512xbf16>
    %cst_16 = arith.constant dense<0.000000e+00> : vector<8x512xf32>
    %24 = tpu.matmul %22, %23, %cst_16 {dimension_numbers = #tpu.dot_dimension_numbers<[1], [0], [0], [1], [0, 0, 1, 1], [], []>} : vector<8x256xbf16>, vector<256x512xbf16>, vector<8x512xf32> -> vector<8x512xf32>
    %c0_17 = arith.constant 0 : index
    %c0_18 = arith.constant 0 : index
    %25 = vector.load %arg7[%c0_17, %c0_18] : memref<1x512xf32, #tpu.memory_space<vmem>>, vector<1x512xf32>
    %26 = vector.broadcast %25 : vector<1x512xf32> to vector<8x512xf32>
    %27 = arith.addf %24, %26 : vector<8x512xf32>
    %cst_19 = arith.constant 0.000000e+00 : f32
    %28 = vector.broadcast %cst_19 : f32 to vector<8x512xf32>
    %29 = arith.cmpf oge, %27, %28 : vector<8x512xf32>
    %cst_20 = arith.constant 2.000000e-01 : f32
    %30 = vector.broadcast %cst_20 : f32 to vector<8x512xf32>
    %31 = arith.mulf %30, %27 : vector<8x512xf32>
    %32 = arith.select %29, %27, %31 : vector<8x512xi1>, vector<8x512xf32>
    %33 = arith.truncf %32 : vector<8x512xf32> to vector<8x512xbf16>
    %c0_21 = arith.constant 0 : index
    %c0_22 = arith.constant 0 : index
    %34 = vector.load %arg8[%c0_21, %c0_22] : memref<512x896xbf16, #tpu.memory_space<vmem>>, vector<512x896xbf16>
    %cst_23 = arith.constant dense<0.000000e+00> : vector<8x896xf32>
    %35 = tpu.matmul %33, %34, %cst_23 {dimension_numbers = #tpu.dot_dimension_numbers<[1], [0], [0], [1], [0, 0, 1, 1], [], []>} : vector<8x512xbf16>, vector<512x896xbf16>, vector<8x896xf32> -> vector<8x896xf32>
    %c0_24 = arith.constant 0 : index
    %c0_25 = arith.constant 0 : index
    %36 = vector.load %arg9[%c0_24, %c0_25] : memref<1x896xf32, #tpu.memory_space<vmem>>, vector<1x896xf32>
    %37 = vector.broadcast %36 : vector<1x896xf32> to vector<8x896xf32>
    %38 = arith.addf %35, %37 : vector<8x896xf32>
    %39 = math.tanh %38 : vector<8x896xf32>
    %c0_26 = arith.constant 0 : index
    %c0_27 = arith.constant 0 : index
    %40 = vector.load %arg10[%c0_26, %c0_27] : memref<8x896xf32, #tpu.memory_space<vmem>>, vector<8x896xf32>
    tpu.vector_store %arg10[%c0_26, %c0_27], %39 {strides = array<i32>} : memref<8x896xf32, #tpu.memory_space<vmem>>, vector<8x896xf32>,
    return
  }
  func.func @transform_0(%arg0: i32) -> (i32, i32) {
    %c0_i32 = arith.constant 0 : i32
    %c0_i32_0 = arith.constant 0 : i32
    return %arg0, %c0_i32 : i32, i32
  }
  func.func @transform_1(%arg0: i32) -> (i32, i32) {
    %c0_i32 = arith.constant 0 : i32
    %c0_i32_0 = arith.constant 0 : i32
    %c0_i32_1 = arith.constant 0 : i32
    return %c0_i32, %c0_i32_0 : i32, i32
  }
  func.func @transform_2(%arg0: i32) -> (i32, i32) {
    %c0_i32 = arith.constant 0 : i32
    %c0_i32_0 = arith.constant 0 : i32
    %c0_i32_1 = arith.constant 0 : i32
    return %c0_i32, %c0_i32_0 : i32, i32
  }
  func.func @transform_3(%arg0: i32) -> (i32, i32) {
    %c0_i32 = arith.constant 0 : i32
    %c0_i32_0 = arith.constant 0 : i32
    %c0_i32_1 = arith.constant 0 : i32
    return %c0_i32, %c0_i32_0 : i32, i32
  }
  func.func @transform_4(%arg0: i32) -> (i32, i32) {
    %c0_i32 = arith.constant 0 : i32
    %c0_i32_0 = arith.constant 0 : i32
    %c0_i32_1 = arith.constant 0 : i32
    return %c0_i32, %c0_i32_0 : i32, i32
  }
  func.func @transform_5(%arg0: i32) -> (i32, i32) {
    %c0_i32 = arith.constant 0 : i32
    %c0_i32_0 = arith.constant 0 : i32
    %c0_i32_1 = arith.constant 0 : i32
    return %c0_i32, %c0_i32_0 : i32, i32
  }
  func.func @transform_6(%arg0: i32) -> (i32, i32) {
    %c0_i32 = arith.constant 0 : i32
    %c0_i32_0 = arith.constant 0 : i32
    %c0_i32_1 = arith.constant 0 : i32
    return %c0_i32, %c0_i32_0 : i32, i32
  }
  func.func @transform_7(%arg0: i32) -> (i32, i32) {
    %c0_i32 = arith.constant 0 : i32
    %c0_i32_0 = arith.constant 0 : i32
    %c0_i32_1 = arith.constant 0 : i32
    return %c0_i32, %c0_i32_0 : i32, i32
  }
  func.func @transform_8(%arg0: i32) -> (i32, i32) {
    %c0_i32 = arith.constant 0 : i32
    %c0_i32_0 = arith.constant 0 : i32
    %c0_i32_1 = arith.constant 0 : i32
    return %c0_i32, %c0_i32_0 : i32, i32
  }
  func.func @transform_9(%arg0: i32) -> (i32, i32) {
    %c0_i32 = arith.constant 0 : i32
    %c0_i32_0 = arith.constant 0 : i32
    return %arg0, %c0_i32 : i32, i32
  }
}

</mosaic_0001>

<bundles_post_ra>
// kernel: tpu_custom_call.1
= control target key start
LH: loop header
LB: loop body
LE: loop exit
PB: predicated region body
PF: predicated region fallthrough
CT: control target
= control target key end

     0   :  { %14 = vsyncpa [#allocation3], 0  ;;  %s3920_s0 = inlined_call_operand.hbm [shape: bf16[8,128], index: 0, kind: input, shape index: {}]   ;;  %s3921_s1 = inlined_call_operand.hbm [shape: bf16[128,128], index: 1, kind: input, shape index: {}]   ;;  %s3922_s2 = inlined_call_operand.vmem [shape: f32[1,128], index: 2, kind: input, shape index: {}]   ;;  %s3923_s3 = inlined_call_operand.hbm [shape: bf16[128,256], index: 3, kind: input, shape index: {}]   ;;  %s3924_s4 = inlined_call_operand.vmem [shape: f32[1,256], index: 4, kind: input, shape index: {}]   ;;  %s3925_s5 = inlined_call_operand.hbm [shape: bf16[256,512], index: 5, kind: input, shape index: {}]   ;;  %s3926_s6 = inlined_call_operand.vmem [shape: f32[1,512], index: 6, kind: input, shape index: {}]   ;;  %s3927_s7 = inlined_call_operand.hbm [shape: bf16[512,896], index: 7, kind: input, shape index: {}]   ;;  %s3928_s8 = inlined_call_operand.vmem [shape: f32[1,896], index: 8, kind: input, shape index: {}]   ;;  %s3929_s9 = inlined_call_operand.hbm [shape: f32[8,896], index: 9, kind: output, shape index: {}]  }
   0x1   :  { %15 = vsyncpa [#allocation6], 0 }
   0x2   :  { %16 = vsyncpa [#allocation9], 0 }
   0x3   :  { %17 = vsyncpa [#allocation4], 0  ;;  %s3702_s30 = smov [#allocation5]   ;;  %s3562_s13 = scalar_lea.hbm %s3921_s1, 1024 }
   0x4   :  { %s33_s10 = sshll.u32 %s3702_s30, 4  ;;  %p3563_p0 = scmp.ne.s32.totalorder %s3921_s1, %s3562_s13  ;;  %s34_s10 = int_to_ptr.vmem [resolvable:$true] %s33_s10 }
   0x5   :  { %p3566_p1 = scmp.lt.u32.totalorder %s3562_s13, %s3921_s1 }
   0x7   :  { %p3568_p2 = pnand %p3566_p1, %p3563_p0 }
   0x9   :  { %3571 = shalt.err (!%p3568_p2)
}
   0xa   :  { %s3572_s18 = scalar_lea.vmem %s34_s10, 1024  ;;  %p3577_p4 = scmp.lt.s32.totalorder %s34_s10, %s34_s10 }
   0xb   :  { %p3573_p3 = scmp.ne.s32.totalorder %s34_s10, %s3572_s18  ;;  %p3578_p5 = scmp.lt.s32.totalorder %s3572_s18, %s3572_s18 }
   0xd   :  { %p3579_p6 = por %p3578_p5, %p3577_p4 }
   0xf   :  { %p3580_p7 = pnand %p3579_p6, %p3573_p3 }
  0x11   :  { %3583 = shalt.err (!%p3580_p7)
}
  0x12   :  { %s3703_s19 = smov 64   ;;  %s3704_s20 = smov 4  }
  0x13   :  { %39 = dma.hbm_to_vmem [thread:$0]  %s3921_s1, 1024, %s34_s10, [#allocation6], %s3703_s19, %s3703_s19, %s3704_s20  }
  0x14   :  { %s3705_s23 = smov [#allocation8]   ;;  %s3584_s27 = scalar_lea.hbm %s3925_s5, 8192 }
  0x15   :  { %s61_s24 = sshll.u32 %s3705_s23, 4  ;;  %p3585_p8 = scmp.ne.s32.totalorder %s3925_s5, %s3584_s27  ;;  %s62_s24 = int_to_ptr.vmem [resolvable:$true] %s61_s24 }
  0x16   :  { %p3588_p9 = scmp.lt.u32.totalorder %s3584_s27, %s3925_s5 }
  0x18   :  { %p3590_p10 = pnand %p3588_p9, %p3585_p8 }
  0x1a   :  { %3593 = shalt.err (!%p3590_p10)
}
  0x1b   :  { %s3594_s12 = scalar_lea.vmem %s62_s24, 8192  ;;  %p3599_p12 = scmp.lt.s32.totalorder %s62_s24, %s62_s24 }
  0x1c   :  { %p3595_p11 = scmp.ne.s32.totalorder %s62_s24, %s3594_s12  ;;  %p3600_p13 = scmp.lt.s32.totalorder %s3594_s12, %s3594_s12 }
  0x1e   :  { %p3601_p0 = por %p3600_p13, %p3599_p12 }
  0x20   :  { %p3602_p1 = pnand %p3601_p0, %p3595_p11 }
  0x22   :  { %3605 = shalt.err (!%p3602_p1)
}
  0x23   :  { %s3706_s1 = smov 256   ;;  %s3707_s10 = smov 16  }
  0x24   :  { %67 = dma.hbm_to_vmem [thread:$0]  %s3925_s5, 8192, %s62_s24, [#allocation9], %s3706_s1, %s3706_s1, %s3707_s10  }
  0x25   :  { %s3708_s15 = smov [#allocation2]   ;;  %s3709_s17 = smov [#allocation7]  }
  0x26   :  { %s24_s16 = sshll.u32 %s3708_s15, 4  ;;  %s47_s18 = sshll.u32 %s3709_s17, 4  ;;  %s25_s16 = int_to_ptr.vmem [resolvable:$true] %s24_s16  ;;  %s3793_s18 = int_to_ptr.vmem [resolvable:$true] %s47_s18 }
  0x27   :  { %s3606_s21 = scalar_lea.hbm %s3920_s0, 64 }
  0x28   :  { %p3607_p2 = scmp.ne.s32.totalorder %s3920_s0, %s3606_s21  ;;  %p3610_p3 = scmp.lt.u32.totalorder %s3606_s21, %s3920_s0 }
  0x2a   :  { %p3612_p4 = pnand %p3610_p3, %p3607_p2 }
  0x2c   :  { %3615 = shalt.err (!%p3612_p4)
}
  0x2d   :  { %s3616_s5 = scalar_lea.vmem %s25_s16, 64  ;;  %p3621_p6 = scmp.lt.s32.totalorder %s25_s16, %s25_s16 }
  0x2e   :  { %p3617_p5 = scmp.ne.s32.totalorder %s25_s16, %s3616_s5  ;;  %p3622_p7 = scmp.lt.s32.totalorder %s3616_s5, %s3616_s5 }
  0x30   :  { %p3623_p8 = por %p3622_p7, %p3621_p6 }
  0x32   :  { %p3624_p9 = pnand %p3623_p8, %p3617_p5 }
  0x34   :  { %3627 = shalt.err (!%p3624_p9)
}
  0x35   :  { %27 = dma.hbm_to_vmem [thread:$0]  %s3920_s0, 64, %s25_s16, [#allocation3]  }
  0x36   :  { %s3628_s30 = scalar_lea.hbm %s3923_s3, 2048 }
  0x37   :  { %p3629_p10 = scmp.ne.s32.totalorder %s3923_s3, %s3628_s30  ;;  %p3632_p11 = scmp.lt.u32.totalorder %s3628_s30, %s3923_s3 }
  0x39   :  { %p3634_p12 = pnand %p3632_p11, %p3629_p10 }
  0x3b   :  { %3637 = shalt.err (!%p3634_p12)
}
  0x3c   :  { %s3638_s13 = scalar_lea.vmem %s3793_s18, 2048  ;;  %p3643_p0 = scmp.lt.s32.totalorder %s3793_s18, %s3793_s18 }
  0x3d   :  { %p3639_p13 = scmp.ne.s32.totalorder %s3793_s18, %s3638_s13  ;;  %p3644_p1 = scmp.lt.s32.totalorder %s3638_s13, %s3638_s13 }
  0x3f   :  { %p3645_p2 = por %p3644_p1, %p3643_p0 }
  0x41   :  { %p3646_p3 = pnand %p3645_p2, %p3639_p13 }
  0x43   :  { %3649 = shalt.err (!%p3646_p3)
}
  0x44   :  { %s3710_s0 = smov 128   ;;  %s3711_s14 = smov 8  }
  0x45   :  { %53 = dma.hbm_to_vmem [thread:$0]  %s3923_s3, 2048, %s3793_s18, [#allocation6], %s3710_s0, %s3710_s0, %s3711_s14  }
  0x46   :  { %s3712_s17 = smov [#allocation10]   ;;  %s3650_s22 = scalar_lea.hbm %s3927_s7, 28672 }
  0x47   :  { %s75_s19 = sshll.u32 %s3712_s17, 4  ;;  %p3651_p4 = scmp.ne.s32.totalorder %s3927_s7, %s3650_s22  ;;  %s76_s19 = int_to_ptr.vmem [resolvable:$true] %s75_s19 }
  0x48   :  { %p3654_p5 = scmp.lt.u32.totalorder %s3650_s22, %s3927_s7 }
  0x4a   :  { %p3656_p6 = pnand %p3654_p5, %p3651_p4 }
  0x4c   :  { %3659 = shalt.err (!%p3656_p6)
}
  0x4d   :  { %s3660_s24 = scalar_lea.vmem %s76_s19, 28672  ;;  %p3665_p8 = scmp.lt.s32.totalorder %s76_s19, %s76_s19 }
  0x4e   :  { %p3661_p7 = scmp.ne.s32.totalorder %s76_s19, %s3660_s24  ;;  %p3666_p9 = scmp.lt.s32.totalorder %s3660_s24, %s3660_s24 }
  0x50   :  { %p3667_p10 = por %p3666_p9, %p3665_p8 }
  0x52   :  { %p3668_p11 = pnand %p3667_p10, %p3661_p7 }
  0x54   :  { %3671 = shalt.err (!%p3668_p11)
}
  0x55   :  { %s3713_s3 = smov 448   ;;  %s3714_s18 = smov 28  }
  0x56   :  { %81 = dma.hbm_to_vmem [thread:$0]  %s3927_s7, 28672, %s76_s19, [#allocation9], %s3713_s3, %s3713_s3, %s3714_s18  }
  0x57   :  { %3694 = dma.done.wait [#allocation3], 64  }
  0x58   :  { %3695 = vsyncadd [#allocation3], 4294967232 }
  0x59   :  { %3696 = dma.done.wait [#allocation6], 3072  }
  0x5a   :  { %3697 = vsyncadd [#allocation6], 4294964224 }
  0x5b   :  { %3698 = dma.done.wait [#allocation9], 36864  }
  0x5c   :  { %3699 = vsyncadd [#allocation9], 4294930432  ;;  %v3715_v0 = vmov 0.0   ;;  %vm3716_vm0 = vmmov 0   ;;  %v3100_v1 = vld [vmem:[#allocation5] sm:$0xff]   ;;  %v3101_v2 = vld [vmem:[#allocation5 + $0x8] sm:$0xff]  }
  0x5d   :  { %3045 = vmatprep.subr.bf16.mxu1 %v3715_v0  ;;  %3061 = vmatprep.mubr.msk.bf16.mxu1 %vm3716_vm0, %v3715_v0  ;;  %v3102_v3 = vld [vmem:[#allocation5 + $0x10] sm:$0xff]   ;;  %v3103_v4 = vld [vmem:[#allocation5 + $0x18] sm:$0xff]   ;;  %v3104_v5 = vld [vmem:[#allocation5 + $0x20] sm:$0xff]   ;;  %v3717_v26 = vmov 0  }
  0x5e   :  { %3046 = vmatpush3.bf16.msra.mxu1 %v3100_v1  ;;  %v3105_v6 = vld [vmem:[#allocation5 + $0x28] sm:$0xff]   ;;  %v3106_v7 = vld [vmem:[#allocation5 + $0x30] sm:$0xff]   ;;  %v3107_v8 = vld [vmem:[#allocation5 + $0x38] sm:$0xff]  }
  0x5f   :  { %3047 = vmatprep.subr.bf16.mxu1 %v3715_v0  ;;  %v3110_v9 = vld [vmem:[#allocation7 + $0x4] ss:$8 sps:$4 sm:$0xff]   ;;  %v100_v10 = vld [vmem:[#allocation2] sm:$0xf]  ;;  %v3108_v11 = vld [vmem:[#allocation7] ss:$8 sps:$4 sm:$0xff]  }
  0x60   :  { %v3113_v12 = vld [vmem:[#allocation7 + $0x14] ss:$8 sps:$4 sm:$0xff]   ;;  %v3111_v13 = vld [vmem:[#allocation7 + $0x10] ss:$8 sps:$4 sm:$0xff]   ;;  %v3116_v14 = vld [vmem:[#allocation7 + $0x24] ss:$8 sps:$4 sm:$0xff]  }
  0x61   :  { %v3114_v15 = vld [vmem:[#allocation7 + $0x20] ss:$8 sps:$4 sm:$0xff]   ;;  %v3119_v16 = vld [vmem:[#allocation7 + $0x34] ss:$8 sps:$4 sm:$0xff]   ;;  %v3117_v17 = vld [vmem:[#allocation7 + $0x30] ss:$8 sps:$4 sm:$0xff]  }
  0x62   :  { %3048 = vmatpush3.bf16.msra.mxu1 %v3101_v2  ;;  %v3122_v18 = vld [vmem:[#allocation7 + $0x44] ss:$8 sps:$4 sm:$0xff]   ;;  %v3120_v19 = vld [vmem:[#allocation7 + $0x40] ss:$8 sps:$4 sm:$0xff]   ;;  %v3125_v20 = vld [vmem:[#allocation7 + $0x54] ss:$8 sps:$4 sm:$0xff]  }
  0x63   :  { %3049 = vmatprep.subr.bf16.mxu1 %v3715_v0  ;;  %v3123_v21 = vld [vmem:[#allocation7 + $0x50] ss:$8 sps:$4 sm:$0xff]   ;;  %v3128_v22 = vld [vmem:[#allocation7 + $0x64] ss:$8 sps:$4 sm:$0xff]   ;;  %v3126_v23 = vld [vmem:[#allocation7 + $0x60] ss:$8 sps:$4 sm:$0xff]  }
  0x64   :  { %v3131_v24 = vld [vmem:[#allocation7 + $0x74] ss:$8 sps:$4 sm:$0xff]   ;;  %v3129_v25 = vld [vmem:[#allocation7 + $0x70] ss:$8 sps:$4 sm:$0xff]  }
  0x65   :  { %v3132_v27 = vld [vmem:[#allocation8 + $0x4] ss:$16 sps:$4 sm:$0xff]   ;;  %v3136_v28 = vld [vmem:[#allocation8 + $0xc] ss:$16 sps:$4 sm:$0xff]   ;;  %v3137_v29 = vld [vmem:[#allocation8] ss:$16 sps:$4 sm:$0xff]  }
  0x66   :  { %3050 = vmatpush3.bf16.msra.mxu1 %v3102_v3  ;;  %v3138_v30 = vld [vmem:[#allocation8 + $0x24] ss:$16 sps:$4 sm:$0xff]   ;;  %779 = vmatprep.subr.bf16.mxu0 %v3132_v27  ;;  %v3143_v31 = vld [vmem:[#allocation8 + $0x20] ss:$16 sps:$4 sm:$0xff]   ;;  %v3142_v2 = vld [vmem:[#allocation8 + $0x2c] ss:$16 sps:$4 sm:$0xff]  }
  0x67   :  { %3051 = vmatprep.subr.bf16.mxu1 %v3715_v0  ;;  %780 = vmatpush1.bf16.msra.mxu0 %v3137_v29  ;;  %v3144_v32 = vld [vmem:[#allocation8 + $0x44] ss:$16 sps:$4 sm:$0xff]   ;;  %v3149_v33 = vld [vmem:[#allocation8 + $0x40] ss:$16 sps:$4 sm:$0xff]   ;;  %v3140_v3 = vld [vmem:[#allocation8 + $0x28] ss:$16 sps:$4 sm:$0xff]  }
  0x68   :  { %781 = vmatprep.subr.bf16.mxu0 %v3138_v30  ;;  %v3150_v34 = vld [vmem:[#allocation8 + $0x64] ss:$16 sps:$4 sm:$0xff]   ;;  %v3155_v35 = vld [vmem:[#allocation8 + $0x60] ss:$16 sps:$4 sm:$0xff]   ;;  %v3212_v27 = vld [vmem:[#allocation8 + $0x1a8] ss:$16 sps:$4 sm:$0xff]  }
  0x69   :  { %v3156_v36 = vld [vmem:[#allocation8 + $0x84] ss:$16 sps:$4 sm:$0xff]   ;;  %v3161_v37 = vld [vmem:[#allocation8 + $0x80] ss:$16 sps:$4 sm:$0xff]   ;;  %v3220_v29 = vld [vmem:[#allocation8 + $0x1cc] ss:$16 sps:$4 sm:$0xff]  }
  0x6a   :  { %3052 = vmatpush3.bf16.msra.mxu1 %v3103_v4  ;;  %v3162_v38 = vld [vmem:[#allocation8 + $0xa4] ss:$16 sps:$4 sm:$0xff]   ;;  %v3167_v39 = vld [vmem:[#allocation8 + $0xa0] ss:$16 sps:$4 sm:$0xff]   ;;  %v3148_v4 = vld [vmem:[#allocation8 + $0x4c] ss:$16 sps:$4 sm:$0xff]  }
  0x6b   :  { %3053 = vmatprep.subr.bf16.mxu1 %v3715_v0  ;;  %782 = vmatpush1.bf16.msra.mxu0 %v3143_v31  ;;  %v3168_v40 = vld [vmem:[#allocation8 + $0xc4] ss:$16 sps:$4 sm:$0xff]   ;;  %v3173_v41 = vld [vmem:[#allocation8 + $0xc0] ss:$16 sps:$4 sm:$0xff]   ;;  %v3218_v30 = vld [vmem:[#allocation8 + $0x1c8] ss:$16 sps:$4 sm:$0xff]  }
  0x6c   :  { %783 = vmatprep.subr.bf16.mxu0 %v3144_v32  ;;  %v3174_v42 = vld [vmem:[#allocation8 + $0xe4] ss:$16 sps:$4 sm:$0xff]   ;;  %v3179_v43 = vld [vmem:[#allocation8 + $0xe0] ss:$16 sps:$4 sm:$0xff]  }
  0x6d   :  { %v3180_v44 = vld [vmem:[#allocation8 + $0x104] ss:$16 sps:$4 sm:$0xff]   ;;  %v3185_v45 = vld [vmem:[#allocation8 + $0x100] ss:$16 sps:$4 sm:$0xff]  }
  0x6e   :  { %3054 = vmatpush3.bf16.msra.mxu1 %v3104_v5  ;;  %v3186_v46 = vld [vmem:[#allocation8 + $0x124] ss:$16 sps:$4 sm:$0xff]   ;;  %v3191_v47 = vld [vmem:[#allocation8 + $0x120] ss:$16 sps:$4 sm:$0xff]   ;;  %v3146_v5 = vld [vmem:[#allocation8 + $0x48] ss:$16 sps:$4 sm:$0xff]  }
  0x6f   :  { %3055 = vmatprep.subr.bf16.mxu1 %v3715_v0  ;;  %784 = vmatpush1.bf16.msra.mxu0 %v3149_v33  ;;  %v3192_v48 = vld [vmem:[#allocation8 + $0x144] ss:$16 sps:$4 sm:$0xff]   ;;  %v3197_v49 = vld [vmem:[#allocation8 + $0x140] ss:$16 sps:$4 sm:$0xff]   ;;  %v3224_v33 = vld [vmem:[#allocation8 + $0x1e8] ss:$16 sps:$4 sm:$0xff]  }
  0x70   :  { %785 = vmatprep.subr.bf16.mxu0 %v3150_v34  ;;  %v3198_v50 = vld [vmem:[#allocation8 + $0x164] ss:$16 sps:$4 sm:$0xff]   ;;  %v3203_v51 = vld [vmem:[#allocation8 + $0x160] ss:$16 sps:$4 sm:$0xff]   ;;  %v3226_v34 = vld [vmem:[#allocation8 + $0x1ec] ss:$16 sps:$4 sm:$0xff]  }
  0x71   :  { %v3204_v52 = vld [vmem:[#allocation8 + $0x184] ss:$16 sps:$4 sm:$0xff]   ;;  %v3209_v53 = vld [vmem:[#allocation8 + $0x180] ss:$16 sps:$4 sm:$0xff]  }
  0x72   :  { %3056 = vmatpush3.bf16.msra.mxu1 %v3105_v6  ;;  %v3210_v54 = vld [vmem:[#allocation8 + $0x1a4] ss:$16 sps:$4 sm:$0xff]   ;;  %v3215_v55 = vld [vmem:[#allocation8 + $0x1a0] ss:$16 sps:$4 sm:$0xff]   ;;  %v3154_v6 = vld [vmem:[#allocation8 + $0x6c] ss:$16 sps:$4 sm:$0xff]  }
  0x73   :  { %3057 = vmatprep.subr.bf16.mxu1 %v3715_v0  ;;  %786 = vmatpush1.bf16.msra.mxu0 %v3155_v35  ;;  %v2679_v56 = vld [vmem:[%s3922_s2] ss:$0 sm:$0xff]  ;;  %v3221_v31 = vld [vmem:[#allocation8 + $0x1c0] ss:$16 sps:$4 sm:$0xff]  }
  0x74   :  { %787 = vmatprep.subr.bf16.mxu0 %v3156_v36  ;;  %v3222_v32 = vld [vmem:[#allocation8 + $0x1e4] ss:$16 sps:$4 sm:$0xff]   ;;  %v3227_v35 = vld [vmem:[#allocation8 + $0x1e0] ss:$16 sps:$4 sm:$0xff]  }
  0x75   :  { %v3230_v36 = vld [vmem:[#allocation10 + $0x4] ss:$28 sps:$4 sm:$0xff]  }
  0x76   :  { %3058 = vmatpush3.bf16.msra.mxu1 %v3106_v7  ;;  %v3152_v7 = vld [vmem:[#allocation8 + $0x68] ss:$16 sps:$4 sm:$0xff]  }
  0x77   :  { %3059 = vmatprep.subr.bf16.mxu1 %v3715_v0  ;;  %788 = vmatpush1.bf16.msra.mxu0 %v3161_v37  ;;  %v3134_v0 = vld [vmem:[#allocation8 + $0x8] ss:$16 sps:$4 sm:$0xff]  }
  0x78   :  { %789 = vmatprep.subr.bf16.mxu0 %v3162_v38  ;;  %v3233_v37 = vld [vmem:[#allocation10 + $0xc] ss:$28 sps:$4 sm:$0xff]   ;;  %v234_v38 = vlaneseq }
  0x7a   :  { %3060 = vmatpush3.bf16.msra.mxu1 %v3107_v8  ;;  %v3160_v8 = vld [vmem:[#allocation8 + $0x8c] ss:$16 sps:$4 sm:$0xff]  }
  0x7b   :  { %324 = vmatprep.subr.bf16.mxu1 %v3110_v9  ;;  %790 = vmatpush1.bf16.msra.mxu0 %v3167_v39  ;;  %v3158_v9 = vld [vmem:[#allocation8 + $0x88] ss:$16 sps:$4 sm:$0xff]   ;;  %v3839_v39 = vshrl.u32 %v234_v38, 7  ;;  %v3297_v38 = vld [vmem:[#allocation10 + $0x270] ss:$28 sps:$4 sm:$0xff]  }
  0x7c   :  { %791 = vmatprep.subr.bf16.mxu0 %v3168_v40 }
  0x7d   :  { %3062 = vmatmul.mubr.bf16.vlgmr.msra.gmra.mrb[0].mxu1 %v100_v10  ;;  %v3166_v10 = vld [vmem:[#allocation8 + $0xac] ss:$16 sps:$4 sm:$0xff]   ;;  %v3842_v40 = vsub.s32 0, %v3839_v39 }
  0x7e   :  { %325 = vmatpush1.bf16.msra.mxu1 %v3108_v11  ;;  %356 = vmatprep.mubr.bf16.mxu1 %v3717_v26  ;;  %v3164_v11 = vld [vmem:[#allocation8 + $0xa8] ss:$16 sps:$4 sm:$0xff]   ;;  %v3214_v26 = vld [vmem:[#allocation8 + $0x1ac] ss:$16 sps:$4 sm:$0xff]  }
  0x7f   :  { %326 = vmatprep.subr.bf16.mxu1 %v3113_v12  ;;  %792 = vmatpush1.bf16.msra.mxu0 %v3173_v41  ;;  %v3172_v12 = vld [vmem:[#allocation8 + $0xcc] ss:$16 sps:$4 sm:$0xff]   ;;  %v232_v41 = vld [vmem:[%s3924_s4] sm:$0x3] }
  0x80   :  { %793 = vmatprep.subr.bf16.mxu0 %v3174_v42  ;;  %v3848_v42 = vsub.s32 1, %v3839_v39 }
  0x82   :  { %327 = vmatpush1.bf16.msra.mxu1 %v3111_v13  ;;  %v3170_v13 = vld [vmem:[#allocation8 + $0xc8] ss:$16 sps:$4 sm:$0xff]  }
  0x83   :  { %328 = vmatprep.subr.bf16.mxu1 %v3116_v14  ;;  %794 = vmatpush1.bf16.msra.mxu0 %v3179_v43  ;;  %v3178_v14 = vld [vmem:[#allocation8 + $0xec] ss:$16 sps:$4 sm:$0xff]   ;;  %v237_v43 = vrot.slane %v232_v41, %v3842_v40 }
  0x84   :  { %795 = vmatprep.subr.bf16.mxu0 %v3180_v44  ;;  %v241_v44 = vrot.slane %v232_v41, %v3848_v42  ;;  %v3302_v41 = vld [vmem:[#allocation10 + $0x2a4] ss:$28 sps:$4 sm:$0xff]  }
  0x86   :  { %329 = vmatpush1.bf16.msra.mxu1 %v3114_v15  ;;  %v3176_v15 = vld [vmem:[#allocation8 + $0xe8] ss:$16 sps:$4 sm:$0xff]  }
  0x87   :  { %330 = vmatprep.subr.bf16.mxu1 %v3119_v16  ;;  %796 = vmatpush1.bf16.msra.mxu0 %v3185_v45  ;;  %v3184_v16 = vld [vmem:[#allocation8 + $0x10c] ss:$16 sps:$4 sm:$0xff]  }
  0x88   :  { %797 = vmatprep.subr.bf16.mxu0 %v3186_v46 }
  0x8a   :  { %331 = vmatpush1.bf16.msra.mxu1 %v3117_v17  ;;  %v3182_v17 = vld [vmem:[#allocation8 + $0x108] ss:$16 sps:$4 sm:$0xff]  }
  0x8b   :  { %332 = vmatprep.subr.bf16.mxu1 %v3122_v18  ;;  %798 = vmatpush1.bf16.msra.mxu0 %v3191_v47  ;;  %v3190_v18 = vld [vmem:[#allocation8 + $0x12c] ss:$16 sps:$4 sm:$0xff]  }
  0x8c   :  { %799 = vmatprep.subr.bf16.mxu0 %v3192_v48 }
  0x8e   :  { %333 = vmatpush1.bf16.msra.mxu1 %v3120_v19  ;;  %v3188_v19 = vld [vmem:[#allocation8 + $0x128] ss:$16 sps:$4 sm:$0xff]  }
  0x8f   :  { %334 = vmatprep.subr.bf16.mxu1 %v3125_v20  ;;  %800 = vmatpush1.bf16.msra.mxu0 %v3197_v49  ;;  %v3196_v20 = vld [vmem:[#allocation8 + $0x14c] ss:$16 sps:$4 sm:$0xff]  }
  0x90   :  { %801 = vmatprep.subr.bf16.mxu0 %v3198_v50 }
  0x92   :  { %335 = vmatpush1.bf16.msra.mxu1 %v3123_v21  ;;  %v3194_v21 = vld [vmem:[#allocation8 + $0x148] ss:$16 sps:$4 sm:$0xff]  }
  0x93   :  { %336 = vmatprep.subr.bf16.mxu1 %v3128_v22  ;;  %802 = vmatpush1.bf16.msra.mxu0 %v3203_v51  ;;  %v3202_v22 = vld [vmem:[#allocation8 + $0x16c] ss:$16 sps:$4 sm:$0xff]  }
  0x94   :  { %803 = vmatprep.subr.bf16.mxu0 %v3204_v52 }
  0x96   :  { %337 = vmatpush1.bf16.msra.mxu1 %v3126_v23  ;;  %v3200_v23 = vld [vmem:[#allocation8 + $0x168] ss:$16 sps:$4 sm:$0xff]  }
  0x97   :  { %338 = vmatprep.subr.bf16.mxu1 %v3131_v24  ;;  %804 = vmatpush1.bf16.msra.mxu0 %v3209_v53  ;;  %v3208_v24 = vld [vmem:[#allocation8 + $0x18c] ss:$16 sps:$4 sm:$0xff]  }
  0x98   :  { %805 = vmatprep.subr.bf16.mxu0 %v3210_v54 }
  0x9a   :  { %339 = vmatpush1.bf16.msra.mxu1 %v3129_v25  ;;  %v3206_v25 = vld [vmem:[#allocation8 + $0x188] ss:$16 sps:$4 sm:$0xff]  }
  0x9b   :  { %820 = vmatprep.subr.bf16.mxu1 %v3136_v28  ;;  %806 = vmatpush1.bf16.msra.mxu0 %v3215_v55  ;;  %v3216_v28 = vld [vmem:[#allocation8 + $0x1c4] ss:$16 sps:$4 sm:$0xff]  }
  0x9c   :  { %807 = vmatprep.subr.bf16.mxu0 %v3216_v28  ;;  %v3287_v28 = vld [vmem:[#allocation10 + $0x204] ss:$28 sps:$4 sm:$0xff]  }
  0x9f   :  { %808 = vmatpush1.bf16.msra.mxu0 %v3221_v31  ;;  %v3290_v31 = vld [vmem:[#allocation10 + $0x234] ss:$28 sps:$4 sm:$0xff]  }
  0xa0   :  { %809 = vmatprep.subr.bf16.mxu0 %v3222_v32  ;;  %v3293_v32 = vld [vmem:[#allocation10 + $0x23c] ss:$28 sps:$4 sm:$0xff]  }
  0xa3   :  { %810 = vmatpush1.bf16.msra.mxu0 %v3227_v35  ;;  %v3296_v35 = vld [vmem:[#allocation10 + $0x26c] ss:$28 sps:$4 sm:$0xff]  }
  0xa4   :  { %2322 = vmatprep.subr.bf16.mxu0 %v3230_v36  ;;  %v3299_v36 = vld [vmem:[#allocation10 + $0x274] ss:$28 sps:$4 sm:$0xff]  }
 0x150   :  { %v206_v57 = vpop.f32.mrb[0].mxu1 }
 0x151   :  { %v207_v58 = vadd.f32 %v2679_v56, %v206_v57  ;;  %v3063_v59 = vpop.f32.mrb[1].mxu1  ;;  %v3228_v56 = vld [vmem:[#allocation10] ss:$28 sps:$4 sm:$0xff]   ;;  %v3231_v57 = vld [vmem:[#allocation10 + $0x8] ss:$28 sps:$4 sm:$0xff]  }
 0x152   :  { %v209_v60 = vpop.f32.mrb[2].mxu1  ;;  %v3236_v59 = vld [vmem:[#allocation10 + $0x3c] ss:$28 sps:$4 sm:$0xff]  }
 0x153   :  { %vm212_vm1 = vcmp.ge.f32.partialorder %v207_v58, 0.0  ;;  %v213_v61 = vmul.f32 0.2, %v207_v58  ;;  %v3064_v62 = vpop.f32.mrb[3].mxu1  ;;  %v3239_v60 = vld [vmem:[#allocation10 + $0x44] ss:$28 sps:$4 sm:$0xff]  }
 0x154   :  { %v3237_v62 = vld [vmem:[#allocation10 + $0x40] ss:$28 sps:$4 sm:$0xff]  }
 0x155   :  { %v214_v63 = vsel %vm212_vm1, %v207_v58, %v213_v61  ;;  %v3234_v61 = vld [vmem:[#allocation10 + $0x38] ss:$28 sps:$4 sm:$0xff]  }
 0x156   :  { %v215_v1 = vpack.c.bf16 %v214_v63, %v214_v63  ;;  %v3242_v63 = vld [vmem:[#allocation10 + $0x74] ss:$28 sps:$4 sm:$0xff]  }
 0x158   :  { %357 = vmatmul.mubr.bf16.vlgmr.msra.gmra.mrb[4].mxu1 %v215_v1  ;;  %v3240_v1 = vld [vmem:[#allocation10 + $0x70] ss:$28 sps:$4 sm:$0xff]  }
 0x159   :  { %821 = vmatpush1.bf16.msra.mxu1 %v3134_v0  ;;  %v3245_v0 = vld [vmem:[#allocation10 + $0x7c] ss:$28 sps:$4 sm:$0xff]  }
 0x15a   :  { %822 = vmatprep.subr.bf16.mxu1 %v3142_v2  ;;  %v3243_v2 = vld [vmem:[#allocation10 + $0x78] ss:$28 sps:$4 sm:$0xff]  }
 0x15d   :  { %823 = vmatpush1.bf16.msra.mxu1 %v3140_v3  ;;  %v3248_v3 = vld [vmem:[#allocation10 + $0xac] ss:$28 sps:$4 sm:$0xff]  }
 0x15e   :  { %824 = vmatprep.subr.bf16.mxu1 %v3148_v4  ;;  %v3251_v4 = vld [vmem:[#allocation10 + $0xb4] ss:$28 sps:$4 sm:$0xff]  }
 0x161   :  { %825 = vmatpush1.bf16.msra.mxu1 %v3146_v5  ;;  %v3246_v5 = vld [vmem:[#allocation10 + $0xa8] ss:$28 sps:$4 sm:$0xff]  }
 0x162   :  { %826 = vmatprep.subr.bf16.mxu1 %v3154_v6  ;;  %v3249_v6 = vld [vmem:[#allocation10 + $0xb0] ss:$28 sps:$4 sm:$0xff]  }
 0x165   :  { %827 = vmatpush1.bf16.msra.mxu1 %v3152_v7  ;;  %v3254_v7 = vld [vmem:[#allocation10 + $0xe4] ss:$28 sps:$4 sm:$0xff]  }
 0x166   :  { %828 = vmatprep.subr.bf16.mxu1 %v3160_v8  ;;  %v3257_v8 = vld [vmem:[#allocation10 + $0xec] ss:$28 sps:$4 sm:$0xff]  }
 0x169   :  { %829 = vmatpush1.bf16.msra.mxu1 %v3158_v9  ;;  %v3252_v9 = vld [vmem:[#allocation10 + $0xe0] ss:$28 sps:$4 sm:$0xff]  }
 0x16a   :  { %830 = vmatprep.subr.bf16.mxu1 %v3166_v10  ;;  %v3255_v10 = vld [vmem:[#allocation10 + $0xe8] ss:$28 sps:$4 sm:$0xff]  }
 0x16d   :  { %831 = vmatpush1.bf16.msra.mxu1 %v3164_v11  ;;  %v3260_v11 = vld [vmem:[#allocation10 + $0x11c] ss:$28 sps:$4 sm:$0xff]  }
 0x16e   :  { %832 = vmatprep.subr.bf16.mxu1 %v3172_v12  ;;  %v3263_v12 = vld [vmem:[#allocation10 + $0x124] ss:$28 sps:$4 sm:$0xff]  }
 0x171   :  { %833 = vmatpush1.bf16.msra.mxu1 %v3170_v13  ;;  %v3258_v13 = vld [vmem:[#allocation10 + $0x118] ss:$28 sps:$4 sm:$0xff]  }
 0x172   :  { %834 = vmatprep.subr.bf16.mxu1 %v3178_v14  ;;  %v3261_v14 = vld [vmem:[#allocation10 + $0x120] ss:$28 sps:$4 sm:$0xff]  }
 0x175   :  { %835 = vmatpush1.bf16.msra.mxu1 %v3176_v15  ;;  %v3266_v15 = vld [vmem:[#allocation10 + $0x154] ss:$28 sps:$4 sm:$0xff]  }
 0x176   :  { %836 = vmatprep.subr.bf16.mxu1 %v3184_v16  ;;  %v3269_v16 = vld [vmem:[#allocation10 + $0x15c] ss:$28 sps:$4 sm:$0xff]  }
 0x179   :  { %837 = vmatpush1.bf16.msra.mxu1 %v3182_v17  ;;  %v3264_v17 = vld [vmem:[#allocation10 + $0x150] ss:$28 sps:$4 sm:$0xff]  }
 0x17a   :  { %838 = vmatprep.subr.bf16.mxu1 %v3190_v18  ;;  %v3267_v18 = vld [vmem:[#allocation10 + $0x158] ss:$28 sps:$4 sm:$0xff]  }
 0x17d   :  { %839 = vmatpush1.bf16.msra.mxu1 %v3188_v19  ;;  %v3272_v19 = vld [vmem:[#allocation10 + $0x18c] ss:$28 sps:$4 sm:$0xff]  }
 0x17e   :  { %840 = vmatprep.subr.bf16.mxu1 %v3196_v20  ;;  %v3275_v20 = vld [vmem:[#allocation10 + $0x194] ss:$28 sps:$4 sm:$0xff]  }
 0x181   :  { %841 = vmatpush1.bf16.msra.mxu1 %v3194_v21  ;;  %v3270_v21 = vld [vmem:[#allocation10 + $0x188] ss:$28 sps:$4 sm:$0xff]  }
 0x182   :  { %842 = vmatprep.subr.bf16.mxu1 %v3202_v22  ;;  %v3273_v22 = vld [vmem:[#allocation10 + $0x190] ss:$28 sps:$4 sm:$0xff]  }
 0x185   :  { %843 = vmatpush1.bf16.msra.mxu1 %v3200_v23  ;;  %v3278_v23 = vld [vmem:[#allocation10 + $0x1c4] ss:$28 sps:$4 sm:$0xff]  }
 0x186   :  { %844 = vmatprep.subr.bf16.mxu1 %v3208_v24  ;;  %v3281_v24 = vld [vmem:[#allocation10 + $0x1cc] ss:$28 sps:$4 sm:$0xff]  }
 0x189   :  { %845 = vmatpush1.bf16.msra.mxu1 %v3206_v25  ;;  %v3276_v25 = vld [vmem:[#allocation10 + $0x1c0] ss:$28 sps:$4 sm:$0xff]  }
 0x18a   :  { %846 = vmatprep.subr.bf16.mxu1 %v3214_v26  ;;  %v3279_v26 = vld [vmem:[#allocation10 + $0x1c8] ss:$28 sps:$4 sm:$0xff]  }
 0x18d   :  { %847 = vmatpush1.bf16.msra.mxu1 %v3212_v27  ;;  %v3284_v27 = vld [vmem:[#allocation10 + $0x1fc] ss:$28 sps:$4 sm:$0xff]  }
 0x18e   :  { %848 = vmatprep.subr.bf16.mxu1 %v3220_v29  ;;  %v3282_v29 = vld [vmem:[#allocation10 + $0x1f8] ss:$28 sps:$4 sm:$0xff]  }
 0x191   :  { %849 = vmatpush1.bf16.msra.mxu1 %v3218_v30  ;;  %v3285_v30 = vld [vmem:[#allocation10 + $0x200] ss:$28 sps:$4 sm:$0xff]  }
 0x192   :  { %850 = vmatprep.subr.bf16.mxu1 %v3226_v34  ;;  %v3291_v34 = vld [vmem:[#allocation10 + $0x238] ss:$28 sps:$4 sm:$0xff]  }
 0x195   :  { %851 = vmatpush1.bf16.msra.mxu1 %v3224_v33  ;;  %v3288_v33 = vld [vmem:[#allocation10 + $0x230] ss:$28 sps:$4 sm:$0xff]  }
 0x196   :  { %2404 = vmatprep.subr.bf16.mxu1 %v3233_v37  ;;  %v3294_v37 = vld [vmem:[#allocation10 + $0x268] ss:$28 sps:$4 sm:$0xff]  }
 0x22b   :  { %v358_v45 = vpop.f32.mrb[4].mxu1 }
 0x22c   :  { %v359_v46 = vadd.f32 %v358_v45, %v237_v43  ;;  %v360_v47 = vpop.f32.mrb[5].mxu1  ;;  %v3305_v43 = vld [vmem:[#allocation10 + $0x2ac] ss:$28 sps:$4 sm:$0xff]  }
 0x22d   :  { %v361_v48 = vadd.f32 %v360_v47, %v241_v44  ;;  %v362_v49 = vpop.f32.mrb[6].mxu1  ;;  %v3300_v44 = vld [vmem:[#allocation10 + $0x2a0] ss:$28 sps:$4 sm:$0xff]   ;;  %v3303_v45 = vld [vmem:[#allocation10 + $0x2a8] ss:$28 sps:$4 sm:$0xff]  }
 0x22e   :  { %vm365_vm2 = vcmp.ge.f32.partialorder %v359_v46, 0.0  ;;  %v367_v50 = vmul.f32 0.2, %v359_v46  ;;  %v363_v51 = vpop.f32.mrb[7].mxu1  ;;  %v3311_v47 = vld [vmem:[#allocation10 + $0x2e4] ss:$28 sps:$4 sm:$0xff]  }
 0x22f   :  { %v368_v52 = vmul.f32 0.2, %v361_v48  ;;  %vm366_vm3 = vcmp.ge.f32.partialorder %v361_v48, 0.0  ;;  %v3309_v49 = vld [vmem:[#allocation10 + $0x2e0] ss:$28 sps:$4 sm:$0xff]  }
 0x230   :  { %v369_v53 = vsel %vm365_vm2, %v359_v46, %v367_v50  ;;  %v3308_v46 = vld [vmem:[#allocation10 + $0x2dc] ss:$28 sps:$4 sm:$0xff]   ;;  %v3314_v50 = vld [vmem:[#allocation10 + $0x314] ss:$28 sps:$4 sm:$0xff]  }
 0x231   :  { %v370_v54 = vsel %vm366_vm3, %v361_v48, %v368_v52  ;;  %v371_v58 = vpack.c.bf16 %v369_v53, %v369_v53  ;;  %v3306_v48 = vld [vmem:[#allocation10 + $0x2d8] ss:$28 sps:$4 sm:$0xff]   ;;  %v3312_v52 = vld [vmem:[#allocation10 + $0x310] ss:$28 sps:$4 sm:$0xff]  }
 0x232   :  { %v372_v55 = vpack.c.bf16 %v370_v54, %v370_v54  ;;  %v3317_v51 = vld [vmem:[#allocation10 + $0x31c] ss:$28 sps:$4 sm:$0xff]   ;;  %v3320_v54 = vld [vmem:[#allocation10 + $0x34c] ss:$28 sps:$4 sm:$0xff]  }
 0x233   :  { %v3315_v53 = vld [vmem:[#allocation10 + $0x318] ss:$28 sps:$4 sm:$0xff]  }
 0x234   :  { %811 = vmatprep.mubr.bf16.mxu0 %v372_v55  ;;  %852 = vmatprep.mubr.bf16.mxu1 %v372_v55  ;;  %v3323_v55 = vld [vmem:[#allocation10 + $0x354] ss:$28 sps:$4 sm:$0xff]  }
 0x235   :  { %812 = vmatmul.mubr.bf16.vlgmr.msra.gmra.mrb[0].mxu0 %v371_v58  ;;  %853 = vmatmul.mubr.bf16.vlgmr.msra.gmra.mrb[8].mxu1 %v371_v58  ;;  %v3326_v58 = vld [vmem:[#allocation10 + $0x384] ss:$28 sps:$4 sm:$0xff]  }
 0x236   :  { %2323 = vmatpush1.bf16.msra.mxu0 %v3228_v56  ;;  %2405 = vmatpush1.bf16.msra.mxu1 %v3231_v57  ;;  %v3318_v56 = vld [vmem:[#allocation10 + $0x348] ss:$28 sps:$4 sm:$0xff]   ;;  %v3321_v57 = vld [vmem:[#allocation10 + $0x350] ss:$28 sps:$4 sm:$0xff]  }
 0x237   :  { %2324 = vmatprep.subr.bf16.mxu0 %v3236_v59  ;;  %2406 = vmatprep.subr.bf16.mxu1 %v3239_v60  ;;  %v3329_v59 = vld [vmem:[#allocation10 + $0x38c] ss:$28 sps:$4 sm:$0xff]   ;;  %v3855_v60 = vld [vmem:[%s3926_s6] sm:$0xf] }
 0x23a   :  { %2325 = vmatpush1.bf16.msra.mxu0 %v3234_v61  ;;  %2407 = vmatpush1.bf16.msra.mxu1 %v3237_v62  ;;  %v453_v61 = vsub.s32 3, %v3839_v39  ;;  %v442_v62 = vrot.slane %v3855_v60, %v3842_v40 }
 0x23b   :  { %2326 = vmatprep.subr.bf16.mxu0 %v3242_v63  ;;  %2408 = vmatprep.subr.bf16.mxu1 %v3245_v0  ;;  %v446_v63 = vrot.slane %v3855_v60, %v3848_v42 }
 0x23c   :  { %v454_v0 = vrot.slane %v3855_v60, %v453_v61 }
 0x23e   :  { %2327 = vmatpush1.bf16.msra.mxu0 %v3240_v1  ;;  %2409 = vmatpush1.bf16.msra.mxu1 %v3243_v2 }
 0x23f   :  { %2328 = vmatprep.subr.bf16.mxu0 %v3248_v3  ;;  %2410 = vmatprep.subr.bf16.mxu1 %v3251_v4 }
 0x242   :  { %2329 = vmatpush1.bf16.msra.mxu0 %v3246_v5  ;;  %2411 = vmatpush1.bf16.msra.mxu1 %v3249_v6 }
 0x243   :  { %2330 = vmatprep.subr.bf16.mxu0 %v3254_v7  ;;  %2412 = vmatprep.subr.bf16.mxu1 %v3257_v8 }
 0x246   :  { %2331 = vmatpush1.bf16.msra.mxu0 %v3252_v9  ;;  %2413 = vmatpush1.bf16.msra.mxu1 %v3255_v10 }
 0x247   :  { %2332 = vmatprep.subr.bf16.mxu0 %v3260_v11  ;;  %2414 = vmatprep.subr.bf16.mxu1 %v3263_v12 }
 0x24a   :  { %2333 = vmatpush1.bf16.msra.mxu0 %v3258_v13  ;;  %2415 = vmatpush1.bf16.msra.mxu1 %v3261_v14 }
 0x24b   :  { %2334 = vmatprep.subr.bf16.mxu0 %v3266_v15  ;;  %2416 = vmatprep.subr.bf16.mxu1 %v3269_v16 }
 0x24e   :  { %2335 = vmatpush1.bf16.msra.mxu0 %v3264_v17  ;;  %2417 = vmatpush1.bf16.msra.mxu1 %v3267_v18 }
 0x24f   :  { %2336 = vmatprep.subr.bf16.mxu0 %v3272_v19  ;;  %2418 = vmatprep.subr.bf16.mxu1 %v3275_v20  ;;  %v3324_v19 = vld [vmem:[#allocation10 + $0x380] ss:$28 sps:$4 sm:$0xff]   ;;  %v3327_v20 = vld [vmem:[#allocation10 + $0x388] ss:$28 sps:$4 sm:$0xff]  }
 0x252   :  { %2337 = vmatpush1.bf16.msra.mxu0 %v3270_v21  ;;  %2419 = vmatpush1.bf16.msra.mxu1 %v3273_v22  ;;  %v3332_v22 = vld [vmem:[#allocation10 + $0x3bc] ss:$28 sps:$4 sm:$0xff]  }
 0x253   :  { %2338 = vmatprep.subr.bf16.mxu0 %v3278_v23  ;;  %2420 = vmatprep.subr.bf16.mxu1 %v3281_v24  ;;  %v3335_v23 = vld [vmem:[#allocation10 + $0x3c4] ss:$28 sps:$4 sm:$0xff]  }
 0x256   :  { %2339 = vmatpush1.bf16.msra.mxu0 %v3276_v25  ;;  %2421 = vmatpush1.bf16.msra.mxu1 %v3279_v26  ;;  %v3330_v25 = vld [vmem:[#allocation10 + $0x3b8] ss:$28 sps:$4 sm:$0xff]   ;;  %v3333_v26 = vld [vmem:[#allocation10 + $0x3c0] ss:$28 sps:$4 sm:$0xff]  }
 0x257   :  { %2340 = vmatprep.subr.bf16.mxu0 %v3284_v27  ;;  %2422 = vmatprep.subr.bf16.mxu1 %v3287_v28  ;;  %v3338_v27 = vld [vmem:[#allocation10 + $0x3f4] ss:$28 sps:$4 sm:$0xff]   ;;  %v3341_v28 = vld [vmem:[#allocation10 + $0x3fc] ss:$28 sps:$4 sm:$0xff]  }
 0x25a   :  { %2341 = vmatpush1.bf16.msra.mxu0 %v3282_v29  ;;  %2423 = vmatpush1.bf16.msra.mxu1 %v3285_v30  ;;  %v3336_v29 = vld [vmem:[#allocation10 + $0x3f0] ss:$28 sps:$4 sm:$0xff]   ;;  %v3339_v30 = vld [vmem:[#allocation10 + $0x3f8] ss:$28 sps:$4 sm:$0xff]  }
 0x25b   :  { %2342 = vmatprep.subr.bf16.mxu0 %v3290_v31  ;;  %2424 = vmatprep.subr.bf16.mxu1 %v3293_v32  ;;  %v3344_v31 = vld [vmem:[#allocation10 + $0x42c] ss:$28 sps:$4 sm:$0xff]   ;;  %v3347_v32 = vld [vmem:[#allocation10 + $0x434] ss:$28 sps:$4 sm:$0xff]  }
 0x25e   :  { %2343 = vmatpush1.bf16.msra.mxu0 %v3288_v33  ;;  %2425 = vmatpush1.bf16.msra.mxu1 %v3291_v34  ;;  %v3342_v33 = vld [vmem:[#allocation10 + $0x428] ss:$28 sps:$4 sm:$0xff]   ;;  %v3345_v34 = vld [vmem:[#allocation10 + $0x430] ss:$28 sps:$4 sm:$0xff]  }
 0x25f   :  { %2344 = vmatprep.subr.bf16.mxu0 %v3296_v35  ;;  %2426 = vmatprep.subr.bf16.mxu1 %v3299_v36  ;;  %v3350_v35 = vld [vmem:[#allocation10 + $0x464] ss:$28 sps:$4 sm:$0xff]   ;;  %v3353_v36 = vld [vmem:[#allocation10 + $0x46c] ss:$28 sps:$4 sm:$0xff]  }
 0x262   :  { %2345 = vmatpush1.bf16.msra.mxu0 %v3294_v37  ;;  %2427 = vmatpush1.bf16.msra.mxu1 %v3297_v38  ;;  %v3348_v37 = vld [vmem:[#allocation10 + $0x460] ss:$28 sps:$4 sm:$0xff]   ;;  %v3351_v38 = vld [vmem:[#allocation10 + $0x468] ss:$28 sps:$4 sm:$0xff]  }
 0x263   :  { %2346 = vmatprep.subr.bf16.mxu0 %v3302_v41  ;;  %2428 = vmatprep.subr.bf16.mxu1 %v3305_v43  ;;  %v3356_v41 = vld [vmem:[#allocation10 + $0x49c] ss:$28 sps:$4 sm:$0xff]   ;;  %v3359_v43 = vld [vmem:[#allocation10 + $0x4a4] ss:$28 sps:$4 sm:$0xff]  }
 0x266   :  { %2347 = vmatpush1.bf16.msra.mxu0 %v3300_v44  ;;  %2429 = vmatpush1.bf16.msra.mxu1 %v3303_v45  ;;  %v3354_v44 = vld [vmem:[#allocation10 + $0x498] ss:$28 sps:$4 sm:$0xff]   ;;  %v3357_v45 = vld [vmem:[#allocation10 + $0x4a0] ss:$28 sps:$4 sm:$0xff]  }
 0x267   :  { %2348 = vmatprep.subr.bf16.mxu0 %v3308_v46  ;;  %2430 = vmatprep.subr.bf16.mxu1 %v3311_v47  ;;  %v3362_v46 = vld [vmem:[#allocation10 + $0x4d4] ss:$28 sps:$4 sm:$0xff]   ;;  %v3365_v47 = vld [vmem:[#allocation10 + $0x4dc] ss:$28 sps:$4 sm:$0xff]  }
 0x26a   :  { %2349 = vmatpush1.bf16.msra.mxu0 %v3306_v48  ;;  %2431 = vmatpush1.bf16.msra.mxu1 %v3309_v49  ;;  %v3360_v48 = vld [vmem:[#allocation10 + $0x4d0] ss:$28 sps:$4 sm:$0xff]   ;;  %v3363_v49 = vld [vmem:[#allocation10 + $0x4d8] ss:$28 sps:$4 sm:$0xff]  }
 0x26b   :  { %2350 = vmatprep.subr.bf16.mxu0 %v3314_v50  ;;  %2432 = vmatprep.subr.bf16.mxu1 %v3317_v51  ;;  %v3368_v50 = vld [vmem:[#allocation10 + $0x50c] ss:$28 sps:$4 sm:$0xff]   ;;  %v3371_v51 = vld [vmem:[#allocation10 + $0x514] ss:$28 sps:$4 sm:$0xff]  }
 0x26e   :  { %2351 = vmatpush1.bf16.msra.mxu0 %v3312_v52  ;;  %2433 = vmatpush1.bf16.msra.mxu1 %v3315_v53  ;;  %v3366_v52 = vld [vmem:[#allocation10 + $0x508] ss:$28 sps:$4 sm:$0xff]   ;;  %v3369_v53 = vld [vmem:[#allocation10 + $0x510] ss:$28 sps:$4 sm:$0xff]  }
 0x26f   :  { %2352 = vmatprep.subr.bf16.mxu0 %v3320_v54  ;;  %2434 = vmatprep.subr.bf16.mxu1 %v3323_v55  ;;  %v3374_v54 = vld [vmem:[#allocation10 + $0x544] ss:$28 sps:$4 sm:$0xff]   ;;  %v3377_v55 = vld [vmem:[#allocation10 + $0x54c] ss:$28 sps:$4 sm:$0xff]  }
 0x272   :  { %2353 = vmatpush1.bf16.msra.mxu0 %v3318_v56  ;;  %2435 = vmatpush1.bf16.msra.mxu1 %v3321_v57  ;;  %v3372_v56 = vld [vmem:[#allocation10 + $0x540] ss:$28 sps:$4 sm:$0xff]   ;;  %v3375_v57 = vld [vmem:[#allocation10 + $0x548] ss:$28 sps:$4 sm:$0xff]  }
 0x273   :  { %2363 = vmatprep.subr.bf16.mxu0 %v3326_v58  ;;  %2445 = vmatprep.subr.bf16.mxu1 %v3329_v59  ;;  %v3380_v58 = vld [vmem:[#allocation10 + $0x57c] ss:$28 sps:$4 sm:$0xff]   ;;  %v3383_v59 = vld [vmem:[#allocation10 + $0x584] ss:$28 sps:$4 sm:$0xff]  }
 0x308   :  { %v813_v1 = vpop.f32.mrb[0].mxu0  ;;  %v3865_v2 = vpop.f32.mrb[8].mxu1 }
 0x309   :  { %v814_v3 = vadd.f32 %v813_v1, %v442_v62  ;;  %v815_v4 = vpop.f32.mrb[1].mxu0  ;;  %v856_v5 = vpop.f32.mrb[9].mxu1  ;;  %v3378_v62 = vld [vmem:[#allocation10 + $0x578] ss:$28 sps:$4 sm:$0xff]  }
 0x30a   :  { %v816_v6 = vadd.f32 %v815_v4, %v446_v63  ;;  %v857_v7 = vadd.f32 %v856_v5, %v454_v0  ;;  %v817_v8 = vpop.f32.mrb[2].mxu0  ;;  %v858_v9 = vpop.f32.mrb[10].mxu1  ;;  %v3381_v63 = vld [vmem:[#allocation10 + $0x580] ss:$28 sps:$4 sm:$0xff]   ;;  %v3386_v0 = vld [vmem:[#allocation10 + $0x5b4] ss:$28 sps:$4 sm:$0xff]  }
 0x30b   :  { %vm861_vm4 = vcmp.ge.f32.partialorder %v814_v3, 0.0  ;;  %v865_v10 = vmul.f32 0.2, %v814_v3  ;;  %v818_v14 = vpop.f32.mrb[3].mxu0  ;;  %v859_v15 = vpop.f32.mrb[11].mxu1 }
 0x30c   :  { %vm862_vm5 = vcmp.ge.f32.partialorder %v816_v6, 0.0  ;;  %v866_v11 = vmul.f32 0.2, %v816_v6  ;;  %vm864_vm6 = vcmp.ge.f32.partialorder %v857_v7, 0.0  ;;  %v868_v12 = vmul.f32 0.2, %v857_v7 }
 0x30d   :  { %v869_v13 = vsel %vm861_vm4, %v814_v3, %v865_v10  ;;  %v3389_v1 = vld [vmem:[#allocation10 + $0x5bc] ss:$28 sps:$4 sm:$0xff]   ;;  %v3384_v3 = vld [vmem:[#allocation10 + $0x5b0] ss:$28 sps:$4 sm:$0xff]   ;;  %v3398_v9 = vld [vmem:[#allocation10 + $0x624] ss:$28 sps:$4 sm:$0xff]  }
 0x30e   :  { %v870_v16 = vsel %vm862_vm5, %v816_v6, %v866_v11  ;;  %v872_v18 = vsel %vm864_vm6, %v857_v7, %v868_v12  ;;  %v3869_v21 = vpack.c.bf16 %v869_v13, %v869_v13  ;;  %v3387_v4 = vld [vmem:[#allocation10 + $0x5b8] ss:$28 sps:$4 sm:$0xff]   ;;  %v3392_v5 = vld [vmem:[#allocation10 + $0x5ec] ss:$28 sps:$4 sm:$0xff]   ;;  %v449_v11 = vsub.s32 2, %v3839_v39 }
 0x30f   :  { %v3867_v17 = vpack.c.bf16 %v870_v16, %v870_v16  ;;  %v3873_v24 = vpack.c.bf16 %v872_v18, %v872_v18  ;;  %v3395_v6 = vld [vmem:[#allocation10 + $0x5f4] ss:$28 sps:$4 sm:$0xff]   ;;  %v3390_v7 = vld [vmem:[#allocation10 + $0x5e8] ss:$28 sps:$4 sm:$0xff]   ;;  %v3396_v12 = vld [vmem:[#allocation10 + $0x620] ss:$28 sps:$4 sm:$0xff]  }
 0x310   :  { %v3393_v8 = vld [vmem:[#allocation10 + $0x5f0] ss:$28 sps:$4 sm:$0xff]   ;;  %v3399_v13 = vld [vmem:[#allocation10 + $0x628] ss:$28 sps:$4 sm:$0xff]   ;;  %v3404_v14 = vld [vmem:[#allocation10 + $0x65c] ss:$28 sps:$4 sm:$0xff]   ;;  %v450_v16 = vrot.slane %v3855_v60, %v449_v11 }
 0x311   :  { %2354 = vmatprep.mubr.bf16.mxu0 %v3867_v17  ;;  %2436 = vmatprep.mubr.bf16.mxu1 %v3867_v17  ;;  %v3401_v10 = vld [vmem:[#allocation10 + $0x62c] ss:$28 sps:$4 sm:$0xff]   ;;  %v3407_v15 = vld [vmem:[#allocation10 + $0x664] ss:$28 sps:$4 sm:$0xff]   ;;  %v3402_v18 = vld [vmem:[#allocation10 + $0x658] ss:$28 sps:$4 sm:$0xff]  }
 0x312   :  { %2355 = vmatmul.mubr.bf16.vlgmr.msra.gmra.mrb[4].mxu0 %v3869_v21  ;;  %2437 = vmatmul.mubr.bf16.vlgmr.msra.gmra.mrb[12].mxu1 %v3869_v21  ;;  %v3414_v60 = vld [vmem:[#allocation10 + $0x6c8] ss:$28 sps:$4 sm:$0xff]  }
 0x313   :  { %2364 = vmatpush1.bf16.msra.mxu0 %v3324_v19  ;;  %2446 = vmatpush1.bf16.msra.mxu1 %v3327_v20  ;;  %v3405_v19 = vld [vmem:[#allocation10 + $0x660] ss:$28 sps:$4 sm:$0xff]   ;;  %v3410_v20 = vld [vmem:[#allocation10 + $0x694] ss:$28 sps:$4 sm:$0xff]  }
 0x314   :  { %2395 = vmatprep.mubr.bf16.mxu0 %v3873_v24  ;;  %2477 = vmatprep.mubr.bf16.mxu1 %v3873_v24 }
 0x315   :  { %2365 = vmatprep.subr.bf16.mxu0 %v3332_v22  ;;  %2447 = vmatprep.subr.bf16.mxu1 %v3335_v23  ;;  %v3413_v22 = vld [vmem:[#allocation10 + $0x69c] ss:$28 sps:$4 sm:$0xff]   ;;  %v855_v23 = vadd.f32 %v3865_v2, %v450_v16  ;;  %v3420_v2 = vld [vmem:[#allocation10 + $0x10] ss:$28 sps:$4 sm:$0xff]  }
 0x316   :  { %v3470_v16 = vld [vmem:[#allocation10 + $0x240] ss:$28 sps:$4 sm:$0xff]  }
 0x317   :  { %2366 = vmatpush1.bf16.msra.mxu0 %v3330_v25  ;;  %2448 = vmatpush1.bf16.msra.mxu1 %v3333_v26  ;;  %v3408_v25 = vld [vmem:[#allocation10 + $0x690] ss:$28 sps:$4 sm:$0xff]   ;;  %v3411_v26 = vld [vmem:[#allocation10 + $0x698] ss:$28 sps:$4 sm:$0xff]   ;;  %vm863_vm7 = vcmp.ge.f32.partialorder %v855_v23, 0.0 }
 0x318   :  { %2367 = vmatprep.subr.bf16.mxu0 %v3338_v27  ;;  %2449 = vmatprep.subr.bf16.mxu1 %v3341_v28  ;;  %v3416_v27 = vld [vmem:[#allocation10 + $0x6cc] ss:$28 sps:$4 sm:$0xff]   ;;  %v3419_v28 = vld [vmem:[#allocation10 + $0x6d4] ss:$28 sps:$4 sm:$0xff]  }
 0x31b   :  { %2368 = vmatpush1.bf16.msra.mxu0 %v3336_v29  ;;  %2450 = vmatpush1.bf16.msra.mxu1 %v3339_v30  ;;  %v867_v29 = vmul.f32 0.2, %v855_v23  ;;  %v3417_v30 = vld [vmem:[#allocation10 + $0x6d0] ss:$28 sps:$4 sm:$0xff]  }
 0x31c   :  { %2369 = vmatprep.subr.bf16.mxu0 %v3344_v31  ;;  %2451 = vmatprep.subr.bf16.mxu1 %v3347_v32  ;;  %v3422_v31 = vld [vmem:[#allocation10 + $0x14] ss:$28 sps:$4 sm:$0xff]  }
 0x31d   :  { %v3423_v32 = vld [vmem:[#allocation10 + $0x1d8] ss:$28 sps:$4 sm:$0xff]  }
 0x31f   :  { %2370 = vmatpush1.bf16.msra.mxu0 %v3342_v33  ;;  %2452 = vmatpush1.bf16.msra.mxu1 %v3345_v34  ;;  %v871_v33 = vsel %vm863_vm7, %v855_v23, %v867_v29  ;;  %v3479_v23 = vld [vmem:[#allocation10 + $0x440] ss:$28 sps:$4 sm:$0xff]   ;;  %v3487_v29 = vld [vmem:[#allocation10 + $0x2ec] ss:$28 sps:$4 sm:$0xff]  }
 0x320   :  { %2371 = vmatprep.subr.bf16.mxu0 %v3350_v35  ;;  %2453 = vmatprep.subr.bf16.mxu1 %v3353_v36  ;;  %v3884_v34 = vpack.c.bf16 %v871_v33, %v871_v33  ;;  %v3424_v35 = vld [vmem:[#allocation10 + $0x18] ss:$28 sps:$4 sm:$0xff]   ;;  %v3427_v36 = vld [vmem:[#allocation10 + $0x4c] ss:$28 sps:$4 sm:$0xff]  }
 0x321   :  { %v3493_v33 = vld [vmem:[#allocation10 + $0x6a8] ss:$28 sps:$4 sm:$0xff]  }
 0x323   :  { %2372 = vmatpush1.bf16.msra.mxu0 %v3348_v37  ;;  %2454 = vmatpush1.bf16.msra.mxu1 %v3351_v38  ;;  %v3428_v37 = vld [vmem:[#allocation10 + $0x210] ss:$28 sps:$4 sm:$0xff]   ;;  %v3425_v38 = vld [vmem:[#allocation10 + $0x48] ss:$28 sps:$4 sm:$0xff]  }
 0x324   :  { %2373 = vmatprep.subr.bf16.mxu0 %v3356_v41  ;;  %2455 = vmatprep.subr.bf16.mxu1 %v3359_v43  ;;  %v3429_v41 = vld [vmem:[#allocation10 + $0x50] ss:$28 sps:$4 sm:$0xff]   ;;  %v3432_v43 = vld [vmem:[#allocation10 + $0x84] ss:$28 sps:$4 sm:$0xff]  }
 0x327   :  { %2374 = vmatpush1.bf16.msra.mxu0 %v3354_v44  ;;  %2456 = vmatpush1.bf16.msra.mxu1 %v3357_v45  ;;  %v3433_v44 = vld [vmem:[#allocation10 + $0x248] ss:$28 sps:$4 sm:$0xff]   ;;  %v3430_v45 = vld [vmem:[#allocation10 + $0x80] ss:$28 sps:$4 sm:$0xff]  }
 0x328   :  { %2375 = vmatprep.subr.bf16.mxu0 %v3362_v46  ;;  %2457 = vmatprep.subr.bf16.mxu1 %v3365_v47  ;;  %v3434_v46 = vld [vmem:[#allocation10 + $0x88] ss:$28 sps:$4 sm:$0xff]   ;;  %v3437_v47 = vld [vmem:[#allocation10 + $0xbc] ss:$28 sps:$4 sm:$0xff]  }
 0x32b   :  { %2376 = vmatpush1.bf16.msra.mxu0 %v3360_v48  ;;  %2458 = vmatpush1.bf16.msra.mxu1 %v3363_v49  ;;  %v3438_v48 = vld [vmem:[#allocation10 + $0x280] ss:$28 sps:$4 sm:$0xff]   ;;  %v3435_v49 = vld [vmem:[#allocation10 + $0xb8] ss:$28 sps:$4 sm:$0xff]  }
 0x32c   :  { %2377 = vmatprep.subr.bf16.mxu0 %v3368_v50  ;;  %2459 = vmatprep.subr.bf16.mxu1 %v3371_v51  ;;  %v3439_v50 = vld [vmem:[#allocation10 + $0xc0] ss:$28 sps:$4 sm:$0xff]   ;;  %v3442_v51 = vld [vmem:[#allocation10 + $0xf4] ss:$28 sps:$4 sm:$0xff]  }
 0x32f   :  { %2378 = vmatpush1.bf16.msra.mxu0 %v3366_v52  ;;  %2460 = vmatpush1.bf16.msra.mxu1 %v3369_v53  ;;  %v3440_v52 = vld [vmem:[#allocation10 + $0xf0] ss:$28 sps:$4 sm:$0xff]   ;;  %v3444_v53 = vld [vmem:[#allocation10 + $0xf8] ss:$28 sps:$4 sm:$0xff]  }
 0x330   :  { %2379 = vmatprep.subr.bf16.mxu0 %v3374_v54  ;;  %2461 = vmatprep.subr.bf16.mxu1 %v3377_v55  ;;  %v3447_v54 = vld [vmem:[#allocation10 + $0x12c] ss:$28 sps:$4 sm:$0xff]  }
 0x331   :  { %v3448_v55 = vld [vmem:[#allocation10 + $0x2f0] ss:$28 sps:$4 sm:$0xff]  }
 0x333   :  { %2380 = vmatpush1.bf16.msra.mxu0 %v3372_v56  ;;  %2462 = vmatpush1.bf16.msra.mxu1 %v3375_v57  ;;  %v3445_v56 = vld [vmem:[#allocation10 + $0x128] ss:$28 sps:$4 sm:$0xff]   ;;  %v3449_v57 = vld [vmem:[#allocation10 + $0x130] ss:$28 sps:$4 sm:$0xff]  }
 0x334   :  { %2381 = vmatprep.subr.bf16.mxu0 %v3380_v58  ;;  %2463 = vmatprep.subr.bf16.mxu1 %v3383_v59  ;;  %v3452_v58 = vld [vmem:[#allocation10 + $0x164] ss:$28 sps:$4 sm:$0xff]  }
 0x335   :  { %v3453_v59 = vld [vmem:[#allocation10 + $0x328] ss:$28 sps:$4 sm:$0xff]  }
 0x337   :  { %2382 = vmatpush1.bf16.msra.mxu0 %v3378_v62  ;;  %2464 = vmatpush1.bf16.msra.mxu1 %v3381_v63  ;;  %v3450_v62 = vld [vmem:[#allocation10 + $0x160] ss:$28 sps:$4 sm:$0xff]   ;;  %v3454_v63 = vld [vmem:[#allocation10 + $0x168] ss:$28 sps:$4 sm:$0xff]  }
 0x338   :  { %2383 = vmatprep.subr.bf16.mxu0 %v3386_v0  ;;  %2465 = vmatprep.subr.bf16.mxu1 %v3389_v1  ;;  %v3457_v0 = vld [vmem:[#allocation10 + $0x19c] ss:$28 sps:$4 sm:$0xff]  }
 0x339   :  { %v3458_v1 = vld [vmem:[#allocation10 + $0x360] ss:$28 sps:$4 sm:$0xff]  }
 0x33b   :  { %2384 = vmatpush1.bf16.msra.mxu0 %v3384_v3  ;;  %2466 = vmatpush1.bf16.msra.mxu1 %v3387_v4  ;;  %v3455_v3 = vld [vmem:[#allocation10 + $0x198] ss:$28 sps:$4 sm:$0xff]   ;;  %v3459_v4 = vld [vmem:[#allocation10 + $0x1a0] ss:$28 sps:$4 sm:$0xff]  }
 0x33c   :  { %2385 = vmatprep.subr.bf16.mxu0 %v3392_v5  ;;  %2467 = vmatprep.subr.bf16.mxu1 %v3395_v6  ;;  %v3462_v5 = vld [vmem:[#allocation10 + $0x1d4] ss:$28 sps:$4 sm:$0xff]  }
 0x33d   :  { %v3463_v6 = vld [vmem:[#allocation10 + $0x558] ss:$28 sps:$4 sm:$0xff]  }
 0x33f   :  { %2386 = vmatpush1.bf16.msra.mxu0 %v3390_v7  ;;  %2468 = vmatpush1.bf16.msra.mxu1 %v3393_v8  ;;  %v3460_v7 = vld [vmem:[#allocation10 + $0x1d0] ss:$28 sps:$4 sm:$0xff]   ;;  %v3464_v8 = vld [vmem:[#allocation10 + $0x398] ss:$28 sps:$4 sm:$0xff]  }
 0x340   :  { %2387 = vmatprep.subr.bf16.mxu0 %v3398_v9  ;;  %2469 = vmatprep.subr.bf16.mxu1 %v3401_v10  ;;  %v3467_v9 = vld [vmem:[#allocation10 + $0x20c] ss:$28 sps:$4 sm:$0xff]  }
 0x341   :  { %v3468_v10 = vld [vmem:[#allocation10 + $0x590] ss:$28 sps:$4 sm:$0xff]  }
 0x343   :  { %2388 = vmatpush1.bf16.msra.mxu0 %v3396_v12  ;;  %2470 = vmatpush1.bf16.msra.mxu1 %v3399_v13  ;;  %v3465_v12 = vld [vmem:[#allocation10 + $0x208] ss:$28 sps:$4 sm:$0xff]   ;;  %v3469_v13 = vld [vmem:[#allocation10 + $0x3d0] ss:$28 sps:$4 sm:$0xff]  }
 0x344   :  { %2389 = vmatprep.subr.bf16.mxu0 %v3404_v14  ;;  %2471 = vmatprep.subr.bf16.mxu1 %v3407_v15  ;;  %v3472_v14 = vld [vmem:[#allocation10 + $0x244] ss:$28 sps:$4 sm:$0xff]  }
 0x345   :  { %v3473_v15 = vld [vmem:[#allocation10 + $0x5c8] ss:$28 sps:$4 sm:$0xff]  }
 0x347   :  { %2390 = vmatpush1.bf16.msra.mxu0 %v3402_v18  ;;  %2472 = vmatpush1.bf16.msra.mxu1 %v3405_v19  ;;  %v3474_v18 = vld [vmem:[#allocation10 + $0x408] ss:$28 sps:$4 sm:$0xff]   ;;  %v3477_v19 = vld [vmem:[#allocation10 + $0x27c] ss:$28 sps:$4 sm:$0xff]  }
 0x348   :  { %2391 = vmatprep.subr.bf16.mxu0 %v3410_v20  ;;  %2473 = vmatprep.subr.bf16.mxu1 %v3413_v22  ;;  %v3478_v20 = vld [vmem:[#allocation10 + $0x600] ss:$28 sps:$4 sm:$0xff]   ;;  %v3475_v22 = vld [vmem:[#allocation10 + $0x278] ss:$28 sps:$4 sm:$0xff]  }
 0x34b   :  { %2392 = vmatpush1.bf16.msra.mxu0 %v3408_v25  ;;  %2474 = vmatpush1.bf16.msra.mxu1 %v3411_v26  ;;  %v3482_v25 = vld [vmem:[#allocation10 + $0x2b4] ss:$28 sps:$4 sm:$0xff]  }
 0x34c   :  { %2393 = vmatprep.subr.bf16.mxu0 %v3416_v27  ;;  %2475 = vmatprep.subr.bf16.mxu1 %v3419_v28  ;;  %v3483_v26 = vld [vmem:[#allocation10 + $0x638] ss:$28 sps:$4 sm:$0xff]   ;;  %v3480_v27 = vld [vmem:[#allocation10 + $0x2b0] ss:$28 sps:$4 sm:$0xff]  }
 0x34d   :  { %v3484_v28 = vld [vmem:[#allocation10 + $0x478] ss:$28 sps:$4 sm:$0xff]  }
 0x34f   :  { %2394 = vmatpush1.bf16.msra.mxu0 %v3414_v60  ;;  %2476 = vmatpush1.bf16.msra.mxu1 %v3417_v30  ;;  %v3488_v60 = vld [vmem:[#allocation10 + $0x670] ss:$28 sps:$4 sm:$0xff]   ;;  %v3485_v30 = vld [vmem:[#allocation10 + $0x2e8] ss:$28 sps:$4 sm:$0xff]  }
 0x350   :  { %2486 = vmatprep.subr.bf16.mxu0 %v3422_v31  ;;  %3001 = vmatprep.subr.bf16.mxu1 %v3423_v32  ;;  %v3489_v31 = vld [vmem:[#allocation10 + $0x4b0] ss:$28 sps:$4 sm:$0xff]   ;;  %v3492_v32 = vld [vmem:[#allocation10 + $0x324] ss:$28 sps:$4 sm:$0xff]  }
 0x352   :  { %2396 = vmatmul.mubr.bf16.vlgmr.msra.gmra.mrb[4].mxu0 %v3884_v34  ;;  %2478 = vmatmul.mubr.bf16.vlgmr.msra.gmra.mrb[12].mxu1 %v3884_v34 }
 0x353   :  { %2487 = vmatpush1.bf16.msra.mxu0 %v3420_v2  ;;  %2518 = vmatprep.mubr.bf16.mxu0 %v3867_v17  ;;  %v3490_v2 = vld [vmem:[#allocation10 + $0x320] ss:$28 sps:$4 sm:$0xff]  }
 0x354   :  { %3002 = vmatpush3.bf16.msra.mxu1 %v3424_v35  ;;  %2600 = vmatprep.mubr.bf16.mxu1 %v3867_v17  ;;  %v3443_v17 = vld [vmem:[#allocation10 + $0x2b8] ss:$28 sps:$4 sm:$0xff]   ;;  %v3494_v35 = vld [vmem:[#allocation10 + $0x4e8] ss:$28 sps:$4 sm:$0xff]  }
 0x355   :  { %2488 = vmatprep.subr.bf16.mxu0 %v3427_v36  ;;  %3003 = vmatprep.subr.bf16.mxu1 %v3428_v37  ;;  %v3497_v36 = vld [vmem:[#allocation10 + $0x35c] ss:$28 sps:$4 sm:$0xff]  }
 0x356   :  { %v3498_v37 = vld [vmem:[#allocation10 + $0x6e0] ss:$28 sps:$4 sm:$0xff]  }
 0x357   :  { %2489 = vmatpush1.bf16.msra.mxu0 %v3425_v38  ;;  %v3495_v38 = vld [vmem:[#allocation10 + $0x358] ss:$28 sps:$4 sm:$0xff]  }
 0x358   :  { %3004 = vmatpush3.bf16.msra.mxu1 %v3429_v41  ;;  %2490 = vmatprep.subr.bf16.mxu0 %v3432_v43  ;;  %v3499_v41 = vld [vmem:[#allocation10 + $0x520] ss:$28 sps:$4 sm:$0xff]   ;;  %v3502_v43 = vld [vmem:[#allocation10 + $0x394] ss:$28 sps:$4 sm:$0xff]  }
 0x359   :  { %3005 = vmatprep.subr.bf16.mxu1 %v3433_v44  ;;  %v3500_v44 = vld [vmem:[#allocation10 + $0x390] ss:$28 sps:$4 sm:$0xff]  }
 0x35b   :  { %2491 = vmatpush1.bf16.msra.mxu0 %v3430_v45  ;;  %v3505_v45 = vld [vmem:[#allocation10 + $0x3cc] ss:$28 sps:$4 sm:$0xff]  }
 0x35c   :  { %3006 = vmatpush3.bf16.msra.mxu1 %v3434_v46  ;;  %2492 = vmatprep.subr.bf16.mxu0 %v3437_v47  ;;  %v3503_v46 = vld [vmem:[#allocation10 + $0x3c8] ss:$28 sps:$4 sm:$0xff]  }
 0x35d   :  { %3007 = vmatprep.subr.bf16.mxu1 %v3438_v48  ;;  %v3508_v47 = vld [vmem:[#allocation10 + $0x404] ss:$28 sps:$4 sm:$0xff]  }
 0x35e   :  { %v3506_v48 = vld [vmem:[#allocation10 + $0x400] ss:$28 sps:$4 sm:$0xff]  }
 0x35f   :  { %2493 = vmatpush1.bf16.msra.mxu0 %v3435_v49  ;;  %v3511_v49 = vld [vmem:[#allocation10 + $0x43c] ss:$28 sps:$4 sm:$0xff]  }
 0x360   :  { %3008 = vmatpush3.bf16.msra.mxu1 %v3439_v50  ;;  %2494 = vmatprep.subr.bf16.mxu0 %v3442_v51  ;;  %v3509_v50 = vld [vmem:[#allocation10 + $0x438] ss:$28 sps:$4 sm:$0xff]  }
 0x361   :  { %3009 = vmatprep.subr.bf16.mxu1 %v3443_v17  ;;  %v3514_v51 = vld [vmem:[#allocation10 + $0x474] ss:$28 sps:$4 sm:$0xff]  }
 0x362   :  { %v3512_v17 = vld [vmem:[#allocation10 + $0x470] ss:$28 sps:$4 sm:$0xff]  }
 0x363   :  { %2495 = vmatpush1.bf16.msra.mxu0 %v3440_v52  ;;  %v3515_v52 = vld [vmem:[#allocation10 + $0x4a8] ss:$28 sps:$4 sm:$0xff]  }
 0x364   :  { %3010 = vmatpush3.bf16.msra.mxu1 %v3444_v53  ;;  %2496 = vmatprep.subr.bf16.mxu0 %v3447_v54  ;;  %v3520_v53 = vld [vmem:[#allocation10 + $0x4e4] ss:$28 sps:$4 sm:$0xff]   ;;  %v3523_v54 = vld [vmem:[#allocation10 + $0x51c] ss:$28 sps:$4 sm:$0xff]  }
 0x365   :  { %3011 = vmatprep.subr.bf16.mxu1 %v3448_v55  ;;  %v3521_v55 = vld [vmem:[#allocation10 + $0x518] ss:$28 sps:$4 sm:$0xff]  }
 0x367   :  { %2497 = vmatpush1.bf16.msra.mxu0 %v3445_v56  ;;  %v3526_v56 = vld [vmem:[#allocation10 + $0x554] ss:$28 sps:$4 sm:$0xff]  }
 0x368   :  { %3012 = vmatpush3.bf16.msra.mxu1 %v3449_v57  ;;  %2498 = vmatprep.subr.bf16.mxu0 %v3452_v58  ;;  %v3524_v57 = vld [vmem:[#allocation10 + $0x550] ss:$28 sps:$4 sm:$0xff]  }
 0x369   :  { %3013 = vmatprep.subr.bf16.mxu1 %v3453_v59  ;;  %v3529_v58 = vld [vmem:[#allocation10 + $0x58c] ss:$28 sps:$4 sm:$0xff]  }
 0x36a   :  { %v3527_v59 = vld [vmem:[#allocation10 + $0x588] ss:$28 sps:$4 sm:$0xff]  }
 0x36b   :  { %2499 = vmatpush1.bf16.msra.mxu0 %v3450_v62  ;;  %v3532_v62 = vld [vmem:[#allocation10 + $0x5c4] ss:$28 sps:$4 sm:$0xff]  }
 0x36c   :  { %3014 = vmatpush3.bf16.msra.mxu1 %v3454_v63  ;;  %2500 = vmatprep.subr.bf16.mxu0 %v3457_v0  ;;  %v3530_v63 = vld [vmem:[#allocation10 + $0x5c0] ss:$28 sps:$4 sm:$0xff]  }
 0x36d   :  { %3015 = vmatprep.subr.bf16.mxu1 %v3458_v1  ;;  %v3535_v0 = vld [vmem:[#allocation10 + $0x5fc] ss:$28 sps:$4 sm:$0xff]  }
 0x36e   :  { %v3533_v1 = vld [vmem:[#allocation10 + $0x5f8] ss:$28 sps:$4 sm:$0xff]  }
 0x36f   :  { %2501 = vmatpush1.bf16.msra.mxu0 %v3455_v3  ;;  %v3538_v3 = vld [vmem:[#allocation10 + $0x634] ss:$28 sps:$4 sm:$0xff]  }
 0x370   :  { %3016 = vmatpush3.bf16.msra.mxu1 %v3459_v4  ;;  %2502 = vmatprep.subr.bf16.mxu0 %v3462_v5  ;;  %v3536_v4 = vld [vmem:[#allocation10 + $0x630] ss:$28 sps:$4 sm:$0xff]  }
 0x371   :  { %3023 = vmatprep.subr.bf16.mxu1 %v3463_v6  ;;  %v3541_v5 = vld [vmem:[#allocation10 + $0x66c] ss:$28 sps:$4 sm:$0xff]  }
 0x372   :  { %v3539_v6 = vld [vmem:[#allocation10 + $0x668] ss:$28 sps:$4 sm:$0xff]  }
 0x373   :  { %2601 = vmatmul.mubr.bf16.vlgmr.msra.gmra.mrb[16].mxu1 %v3869_v21  ;;  %2503 = vmatpush1.bf16.msra.mxu0 %v3460_v7  ;;  %v3544_v7 = vld [vmem:[#allocation10 + $0x6a4] ss:$28 sps:$4 sm:$0xff]  }
 0x374   :  { %3024 = vmatpush3.bf16.msra.mxu1 %v3464_v8  ;;  %2640 = vmatprep.mubr.bf16.mxu1 %v3873_v24  ;;  %v3542_v8 = vld [vmem:[#allocation10 + $0x6a0] ss:$28 sps:$4 sm:$0xff]  }
 0x375   :  { %2504 = vmatprep.subr.bf16.mxu0 %v3467_v9  ;;  %3025 = vmatprep.subr.bf16.mxu1 %v3468_v10  ;;  %v3547_v9 = vld [vmem:[#allocation10 + $0x6dc] ss:$28 sps:$4 sm:$0xff]  }
 0x376   :  { %v3545_v10 = vld [vmem:[#allocation10 + $0x6d8] ss:$28 sps:$4 sm:$0xff]  }
 0x377   :  { %2505 = vmatpush1.bf16.msra.mxu0 %v3465_v12  ;;  %v1133_v12 = vld [vmem:[%s3928_s8] sm:$0xff]  ;;  %s3718_s8 = smov [#allocation11]  }
 0x378   :  { %3026 = vmatpush3.bf16.msra.mxu1 %v3469_v13  ;;  %2506 = vmatprep.subr.bf16.mxu0 %v3472_v14  ;;  %v1138_v13 = vrot.slane %v1133_v12, %v3842_v40  ;;  %v1146_v14 = vrot.slane %v1133_v12, %v449_v11  ;;  %s2668_s1 = sshll.u32 %s3718_s8, 4  ;;  %s2669_s1 = int_to_ptr.vmem [resolvable:$true] %s2668_s1 }
 0x379   :  { %3027 = vmatprep.subr.bf16.mxu1 %v3473_v15  ;;  %v1142_v15 = vrot.slane %v1133_v12, %v3848_v42  ;;  %s3672_s10 = scalar_lea.vmem %s2669_s1, 896  ;;  %p3677_p13 = scmp.lt.s32.totalorder %s2669_s1, %s2669_s1 }
 0x37a   :  { %p3673_p12 = scmp.ne.s32.totalorder %s2669_s1, %s3672_s10  ;;  %p3678_p0 = scmp.lt.s32.totalorder %s3672_s10, %s3672_s10 }
 0x37b   :  { %2507 = vmatpush1.bf16.msra.mxu0 %v3470_v16  ;;  %v1150_v16 = vrot.slane %v1133_v12, %v453_v61 }
 0x37c   :  { %3028 = vmatpush3.bf16.msra.mxu1 %v3474_v18  ;;  %2508 = vmatprep.subr.bf16.mxu0 %v3477_v19  ;;  %p3679_p1 = por %p3678_p0, %p3677_p13 }
 0x37d   :  { %3029 = vmatprep.subr.bf16.mxu1 %v3478_v20 }
 0x37e   :  { %p3680_p2 = pnand %p3679_p1, %p3673_p12 }
 0x37f   :  { %2509 = vmatpush1.bf16.msra.mxu0 %v3475_v22 }
 0x380   :  { %3030 = vmatpush3.bf16.msra.mxu1 %v3479_v23  ;;  %2510 = vmatprep.subr.bf16.mxu0 %v3482_v25 }
 0x381   :  { %3031 = vmatprep.subr.bf16.mxu1 %v3483_v26 }
 0x383   :  { %2511 = vmatpush1.bf16.msra.mxu0 %v3480_v27 }
 0x384   :  { %3032 = vmatpush3.bf16.msra.mxu1 %v3484_v28  ;;  %2512 = vmatprep.subr.bf16.mxu0 %v3487_v29 }
 0x385   :  { %3033 = vmatprep.subr.bf16.mxu1 %v3488_v60 }
 0x387   :  { %2513 = vmatpush1.bf16.msra.mxu0 %v3485_v30 }
 0x388   :  { %3034 = vmatpush3.bf16.msra.mxu1 %v3489_v31  ;;  %2514 = vmatprep.subr.bf16.mxu0 %v3492_v32 }
 0x389   :  { %3035 = vmatprep.subr.bf16.mxu1 %v3493_v33 }
 0x38b   :  { %2515 = vmatpush1.bf16.msra.mxu0 %v3490_v2 }
 0x38c   :  { %3036 = vmatpush3.bf16.msra.mxu1 %v3494_v35  ;;  %2516 = vmatprep.subr.bf16.mxu0 %v3497_v36  ;;  %v1161_v35 = vsub.s32 6, %v3839_v39 }
 0x38d   :  { %3037 = vmatprep.subr.bf16.mxu1 %v3498_v37 }
 0x38e   :  { %v1162_v36 = vrot.slane %v1133_v12, %v1161_v35 }
 0x38f   :  { %2517 = vmatpush1.bf16.msra.mxu0 %v3495_v38 }
 0x390   :  { %3038 = vmatpush3.bf16.msra.mxu1 %v3499_v41  ;;  %2527 = vmatprep.subr.bf16.mxu0 %v3502_v43 }
 0x392   :  { %2519 = vmatmul.mubr.bf16.vlgmr.msra.gmra.mrb[8].mxu0 %v3869_v21  ;;  %v3517_v21 = vld [vmem:[#allocation10 + $0x4ac] ss:$28 sps:$4 sm:$0xff]  }
 0x393   :  { %2641 = vmatmul.mubr.bf16.vlgmr.msra.gmra.mrb[20].mxu1 %v3884_v34  ;;  %2528 = vmatpush1.bf16.msra.mxu0 %v3500_v44 }
 0x394   :  { %2559 = vmatprep.mubr.bf16.mxu0 %v3873_v24  ;;  %2529 = vmatprep.subr.bf16.mxu0 %v3505_v45  ;;  %v3518_v24 = vld [vmem:[#allocation10 + $0x4e0] ss:$28 sps:$4 sm:$0xff]  }
 0x397   :  { %2530 = vmatpush1.bf16.msra.mxu0 %v3503_v46 }
 0x398   :  { %2531 = vmatprep.subr.bf16.mxu0 %v3508_v47 }
 0x39b   :  { %2532 = vmatpush1.bf16.msra.mxu0 %v3506_v48  ;;  %v1153_v48 = vsub.s32 4, %v3839_v39 }
 0x39c   :  { %2533 = vmatprep.subr.bf16.mxu0 %v3511_v49  ;;  %v1157_v49 = vsub.s32 5, %v3839_v39 }
 0x39f   :  { %2534 = vmatpush1.bf16.msra.mxu0 %v3509_v50  ;;  %v1154_v50 = vrot.slane %v1133_v12, %v1153_v48 }
 0x3a0   :  { %2535 = vmatprep.subr.bf16.mxu0 %v3514_v51  ;;  %v1158_v51 = vrot.slane %v1133_v12, %v1157_v49 }
 0x3a3   :  { %2536 = vmatpush1.bf16.msra.mxu0 %v3512_v17 }
 0x3a4   :  { %2537 = vmatprep.subr.bf16.mxu0 %v3517_v21 }
 0x3a7   :  { %2538 = vmatpush1.bf16.msra.mxu0 %v3515_v52 }
 0x3a8   :  { %2539 = vmatprep.subr.bf16.mxu0 %v3520_v53 }
 0x3ab   :  { %2540 = vmatpush1.bf16.msra.mxu0 %v3518_v24 }
 0x3ac   :  { %2541 = vmatprep.subr.bf16.mxu0 %v3523_v54 }
 0x3af   :  { %2542 = vmatpush1.bf16.msra.mxu0 %v3521_v55 }
 0x3b0   :  { %2543 = vmatprep.subr.bf16.mxu0 %v3526_v56 }
 0x3b3   :  { %2544 = vmatpush1.bf16.msra.mxu0 %v3524_v57 }
 0x3b4   :  { %2545 = vmatprep.subr.bf16.mxu0 %v3529_v58 }
 0x3b7   :  { %2546 = vmatpush1.bf16.msra.mxu0 %v3527_v59 }
 0x3b8   :  { %2547 = vmatprep.subr.bf16.mxu0 %v3532_v62 }
 0x3bb   :  { %2548 = vmatpush1.bf16.msra.mxu0 %v3530_v63 }
 0x3bc   :  { %2549 = vmatprep.subr.bf16.mxu0 %v3535_v0 }
 0x3bf   :  { %2550 = vmatpush1.bf16.msra.mxu0 %v3533_v1 }
 0x3c0   :  { %2551 = vmatprep.subr.bf16.mxu0 %v3538_v3 }
 0x3c3   :  { %2552 = vmatpush1.bf16.msra.mxu0 %v3536_v4 }
 0x3c4   :  { %2553 = vmatprep.subr.bf16.mxu0 %v3541_v5 }
 0x3c7   :  { %2554 = vmatpush1.bf16.msra.mxu0 %v3539_v6 }
 0x3c8   :  { %2555 = vmatprep.subr.bf16.mxu0 %v3544_v7 }
 0x3cb   :  { %2556 = vmatpush1.bf16.msra.mxu0 %v3542_v8 }
 0x3cc   :  { %2557 = vmatprep.subr.bf16.mxu0 %v3547_v9 }
 0x3cf   :  { %2558 = vmatpush1.bf16.msra.mxu0 %v3545_v10 }
 0x3d2   :  { %2560 = vmatmul.mubr.bf16.vlgmr.msra.gmra.mrb[8].mxu0 %v3884_v34 }
 0x425   :  { %v2397_v18 = vpop.f32.mrb[4].mxu0  ;;  %v2479_v19 = vpop.f32.mrb[12].mxu1 }
 0x426   :  { %v3065_v20 = vadd.f32 %v2397_v18, %v1138_v13  ;;  %v3067_v22 = vadd.f32 %v2479_v19, %v1146_v14  ;;  %v2399_v23 = vpop.f32.mrb[5].mxu0  ;;  %v2481_v34 = vpop.f32.mrb[13].mxu1 }
 0x427   :  { %v3066_v25 = vadd.f32 %v2399_v23, %v1142_v15  ;;  %v3068_v26 = vadd.f32 %v2481_v34, %v1150_v16  ;;  %v2401_v27 = vpop.f32.mrb[6].mxu0  ;;  %v2483_v28 = vpop.f32.mrb[14].mxu1 }
 0x428   :  { %3548 = vtanh.f32 %v3065_v20  ;;  %v2402_v40 = vpop.f32.mrb[7].mxu0  ;;  %v2484_v29 = vpop.f32.mrb[15].mxu1 }
 0x429   :  { %3550 = vtanh.f32 %v3067_v22 }
 0x42a   :  { %3552 = vtanh.f32 %v3066_v25 }
 0x42b   :  { %3554 = vtanh.f32 %v3068_v26 }
 0x432   :  { %v3549_v42 = vpop.eup %3548 }
 0x433   :  { %v3551_v11 = vpop.eup %3550  ;;  %2655 = vst [vmem:[#allocation11] sm:$0xff] %v3549_v42 }
 0x434   :  { %v3553_v61 = vpop.eup %3552  ;;  %2657 = vst [vmem:[#allocation11 + $0x10] sm:$0xff] %v3551_v11 }
 0x435   :  { %v3555_v60 = vpop.eup %3554  ;;  %2656 = vst [vmem:[#allocation11 + $0x8] sm:$0xff] %v3553_v61 }
 0x436   :  { %2658 = vst [vmem:[#allocation11 + $0x18] sm:$0xff] %v3555_v60 }
 0x446   :  { %v3017_v30 = vpop.f32.mrb[16].mxu1 }
 0x447   :  { %v3018_v31 = vpop.f32.mrb[17].mxu1 }
 0x448   :  { %v3019_v32 = vadd.f32 %v3018_v31, %v3017_v30  ;;  %v3020_v33 = vpop.f32.mrb[18].mxu1 }
 0x449   :  { %v3021_v2 = vpop.f32.mrb[19].mxu1 }
 0x44a   :  { %v2603_v41 = vadd.f32 %v3019_v32, %v1162_v36 }
 0x466   :  { %v3039_v37 = vpop.f32.mrb[20].mxu1 }
 0x467   :  { %v3040_v38 = vpop.f32.mrb[21].mxu1 }
 0x468   :  { %v3041_v43 = vadd.f32 %v3040_v38, %v3039_v37  ;;  %v3042_v44 = vpop.f32.mrb[22].mxu1 }
 0x469   :  { %v3043_v45 = vpop.f32.mrb[23].mxu1 }
 0x46a   :  { %v2643_v46 = vadd.f32 %v3041_v43, %v2603_v41 }
 0x46c   :  { %3556 = vtanh.f32 %v2643_v46 }
 0x476   :  { %v3557_v47 = vpop.eup %3556 }
 0x477   :  { %2661 = vst [vmem:[#allocation11 + $0x30] sm:$0xff] %v3557_v47 }
 0x4a5   :  { %v2561_v17 = vpop.f32.mrb[8].mxu0 }
 0x4a6   :  { %v3069_v21 = vadd.f32 %v2561_v17, %v1154_v50  ;;  %v2563_v52 = vpop.f32.mrb[9].mxu0 }
 0x4a7   :  { %v3070_v53 = vadd.f32 %v2563_v52, %v1158_v51  ;;  %v2565_v24 = vpop.f32.mrb[10].mxu0 }
 0x4a8   :  { %3558 = vtanh.f32 %v3069_v21  ;;  %v2566_v54 = vpop.f32.mrb[11].mxu0 }
 0x4a9   :  { %3560 = vtanh.f32 %v3070_v53 }
 0x4b2   :  { %v3559_v55 = vpop.eup %3558 }
 0x4b3   :  { %v3561_v56 = vpop.eup %3560  ;;  %2659 = vst [vmem:[#allocation11 + $0x20] sm:$0xff] %v3559_v55 }
 0x4b4   :  { %2660 = vst [vmem:[#allocation11 + $0x28] sm:$0xff] %v3561_v56 }
 0x4b5   :  { %3683 = shalt.err (!%p3680_p2)
}
 0x4b6   :  { %s3684_s14 = scalar_lea.hbm %s3929_s9, 896 }
 0x4b7   :  { %p3685_p3 = scmp.ne.s32.totalorder %s3929_s9, %s3684_s14  ;;  %p3688_p4 = scmp.lt.u32.totalorder %s3684_s14, %s3929_s9 }
 0x4b9   :  { %p3690_p5 = pnand %p3688_p4, %p3685_p3 }
 0x4bb   :  { %3693 = shalt.err (!%p3690_p5)
}
 0x4bc   :  { %2671 = dma.vmem_to_hbm [thread:$0]  %s2669_s1, 896, %s3929_s9, [#allocation4]  }
 0x4bd   :  { %3700 = dma.done.wait [#allocation4], 896  }
 0x4be   :  { %3701 = vsyncadd [#allocation4], 4294966400 }
 0x4bf   :  { %2675 = vsyncpa [#allocation3], 1 }
 0x4c0   :  { %2676 = vsyncpa [#allocation6], 1 }
 0x4c1   :  { %2677 = vsyncpa [#allocation9], 1 }
 0x4c2   :  { %2678 = vsyncpa [#allocation4], 1 }

</bundles_post_ra>
